<compile_context>
chip_gen: v7x
topology: tpu7x:2x2x1
jax: 0.10.0
libtpu: 0.0.40
codegen_flags: <defaults>
</compile_context>

<pallas_src>
import functools

import jax
import jax.numpy as jnp
from jax.experimental import pallas as pl
from jax.experimental.pallas import tpu as pltpu


def _round_up(x, m):
    return ((x + m - 1) // m) * m


def _pick_tk(k_aligned, max_tk=2048):
    """Largest multiple of 128 that divides k_aligned and is <= max_tk."""
    m = k_aligned // 128
    best = 1
    for d in range(1, min(m, max_tk // 128) + 1):
        if m % d == 0:
            best = d
    return best * 128


# ----------------------------------------------------------------------------
# Pallas kernel 1: tiled Linear(input_size, 1024) + bias + LeakyReLU
# ----------------------------------------------------------------------------
def _linear1_kernel(x_ref, w_ref, b_ref, o_ref, *, slope):
    """Grid = (N_tiles, K_tiles); K is the reduction ('arbitrary') axis.

    The output block index depends only on the N grid axis, so the (B, tn)
    output block stays VMEM-resident across the K axis and we accumulate
    straight into it (output dtype is f32, so no separate scratch is needed).
    """
    k = pl.program_id(1)

    partial = jnp.dot(x_ref[...], w_ref[...], preferred_element_type=jnp.float32)

    @pl.when(k == 0)
    def _():
        o_ref[...] = partial

    @pl.when(k != 0)
    def _():
        o_ref[...] += partial

    @pl.when(k == pl.num_programs(1) - 1)
    def _():
        y = o_ref[...] + b_ref[...]
        o_ref[...] = jnp.where(y > 0, y, slope * y)


def linear_leaky_layer1(x, w, b, slope=0.2):
    """x: (B, K) f32 with B % 8 == 0, w: (K, N), b: (N,) -> (B, N) f32."""
    B, K = x.shape
    Kw, N = w.shape
    assert K == Kw and b.shape == (N,)
    assert B % 8 == 0

    # N tile: 512-wide keeps >= 2 tiles for N=1024 (lets the parallel axis
    # shard across the 2 TensorCores on v7x; harmless on v5e/v6e).
    tn = 512 if N % 512 == 0 else N

    # K tile: the largest multiple of 128 (<= 2048, so a double-buffered f32
    # weight tile stays <= 8 MiB and fits the default scoped VMEM on every
    # generation, including v7x's 64 MiB physical VMEM) that exactly divides
    # the 128-aligned K.  When K is already 128-aligned this avoids any
    # runtime zero-pad copy of the (potentially huge) layer-1 weight.
    k_aligned = _round_up(K, 128)
    tk = _pick_tk(k_aligned)
    if k_aligned != K:
        # Minimal zero-pad of the contraction dim (only when K % 128 != 0).
        x = jnp.pad(x, ((0, 0), (0, k_aligned - K)))
        w = jnp.pad(w, ((0, k_aligned - K), (0, 0)))

    grid = (N // tn, k_aligned // tk)
    b2 = b.reshape(1, N)

    kernel = functools.partial(_linear1_kernel, slope=slope)

    return pl.pallas_call(
        kernel,
        out_shape=jax.ShapeDtypeStruct((B, N), jnp.float32),
        grid_spec=pltpu.PrefetchScalarGridSpec(
            num_scalar_prefetch=0,
            grid=grid,
            in_specs=[
                pl.BlockSpec((B, tk), lambda j, k: (0, k)),   # x (re-read per N tile)
                pl.BlockSpec((tk, tn), lambda j, k: (k, j)),  # w (streamed once)
                pl.BlockSpec((1, tn), lambda j, k: (0, j)),   # bias
            ],
            out_specs=pl.BlockSpec((B, tn), lambda j, k: (0, j)),
        ),
        compiler_params=pltpu.CompilerParams(
            dimension_semantics=("parallel", "arbitrary"),
        ),
    )(x, w, b2)


# ----------------------------------------------------------------------------
# Pallas kernel 2: fused layers 2-4 (all weights VMEM-resident)
#   Linear(1024,512)+LeakyReLU -> Linear(512,256)+LeakyReLU
#   -> Linear(256,1)+Sigmoid  (the 1-wide output is lane-padded to 128)
# ----------------------------------------------------------------------------
def _tail_kernel(h_ref, w2_ref, b2_ref, w3_ref, b3_ref, w4_ref, b4_ref,
                 o_ref, *, slope):
    h = h_ref[...]
    y = jnp.dot(h, w2_ref[...], preferred_element_type=jnp.float32) + b2_ref[...]
    y = jnp.where(y > 0, y, slope * y)
    # Dropout(0.5) -> identity (eval mode)
    y = jnp.dot(y, w3_ref[...], preferred_element_type=jnp.float32) + b3_ref[...]
    y = jnp.where(y > 0, y, slope * y)
    y = jnp.dot(y, w4_ref[...], preferred_element_type=jnp.float32) + b4_ref[...]
    o_ref[...] = 1.0 / (1.0 + jnp.exp(-y))


def fused_tail(h, w2, b2, w3, b3, w4, b4, slope=0.2):
    """h: (B, 1024) f32 -> (B, 1) f32 (single pallas_call, no grid)."""
    B = h.shape[0]
    n4 = w4.shape[1]                     # 1
    n4_pad = 128                         # lane-dense output store
    w4p = jnp.pad(w4, ((0, 0), (0, n4_pad - n4)))
    b4p = jnp.pad(b4, ((0, n4_pad - n4),))

    kernel = functools.partial(_tail_kernel, slope=slope)
    out = pl.pallas_call(
        kernel,
        out_shape=jax.ShapeDtypeStruct((B, n4_pad), jnp.float32),
    )(
        h,
        w2, b2.reshape(1, -1),
        w3, b3.reshape(1, -1),
        w4p, b4p.reshape(1, -1),
    )
    return out[:, :n4]


# ----------------------------------------------------------------------------
# Discriminator forward (glue in plain JAX, heavy lifting in Pallas)
# ----------------------------------------------------------------------------
def init_discriminator_params(key, input_size):
    """Deterministic PyTorch-style uniform(-1/sqrt(fan_in), 1/sqrt(fan_in))."""
    dims = [input_size, 1024, 512, 256, 1]
    params = []
    for i in range(len(dims) - 1):
        fan_in, fan_out = dims[i], dims[i + 1]
        key, kw, kb = jax.random.split(key, 3)
        bound = 1.0 / jnp.sqrt(jnp.float32(fan_in))
        w = jax.random.uniform(
            kw, (fan_in, fan_out), jnp.float32, -bound, bound
        )
        b = jax.random.uniform(kb, (fan_out,), jnp.float32, -bound, bound)
        params.append((w, b))
    return params


def discriminator_forward(img, params):
    """img: (B, C, H, W) float32  ->  validity (B, 1) float32."""
    B = img.shape[0]
    x = img.reshape(B, -1).astype(jnp.float32)  # row-major flatten (== .view)

    (w1, b1), (w2, b2), (w3, b3), (w4, b4) = params

    # Pad batch to the f32 sublane count (8): unmasked vreg loads/stores,
    # zero extra cost on the weight-stream-bound path.
    B_pad = _round_up(B, 8)
    if B_pad != B:
        x = jnp.pad(x, ((0, B_pad - B), (0, 0)))

    h1 = linear_leaky_layer1(x, w1, b1, slope=0.2)           # (B_pad, 1024)
    # Dropout(0.5) -> identity (eval mode)
    out = fused_tail(h1, w2, b2, w3, b3, w4, b4, slope=0.2)  # (B_pad, 1)
    return out[:B]


# ----------------------------------------------------------------------------
# Reference (pure JAX) for sanity checking
# ----------------------------------------------------------------------------
def discriminator_ref(img, params):
    B = img.shape[0]
    x = img.reshape(B, -1)
    (w1, b1), (w2, b2), (w3, b3), (w4, b4) = params
    leaky = lambda v: jnp.where(v > 0, v, 0.2 * v)
    x = leaky(x @ w1 + b1)
    x = leaky(x @ w2 + b2)
    x = leaky(x @ w3 + b3)
    x = jax.nn.sigmoid(x @ w4 + b4)
    return x


if __name__ == "__main__":
    # Small shapes consistent with the module's flatten-then-MLP forward.
    # (The original module uses 300x300 spatial; we use 16x16 to keep the
    #  synthetic test small: input_size = C*H*W = 4*16*16 = 1024.)
    B, C, H, W = 2, 4, 16, 16
    input_size = C * H * W

    key = jax.random.PRNGKey(0)
    key, k_img = jax.random.split(key)
    img = jax.random.normal(k_img, (B, C, H, W), jnp.float32)

    params = init_discriminator_params(key, input_size)

    out = discriminator_forward(img, params)
    out = jax.block_until_ready(out)

    ref = discriminator_ref(img, params)
    assert out.shape == (B, 1), out.shape
    assert jnp.allclose(out, ref, atol=1e-5, rtol=1e-5), (out, ref)

    print("KERNEL_OK")
</pallas_src>

<mosaic_0001>
module attributes {stable_mosaic.version = 11 : i64} {
  func.func @_linear1_kernel(%arg0: i32, %arg1: i32, %arg2: memref<8x1024xf32, #tpu.memory_space<vmem>>, %arg3: memref<1024x512xf32, #tpu.memory_space<vmem>>, %arg4: memref<1x512xf32, #tpu.memory_space<vmem>>, %arg5: memref<8x512xf32, #tpu.memory_space<vmem>>) attributes {dimension_semantics = [#tpu.dimension_semantics<parallel>, #tpu.dimension_semantics<arbitrary>], iteration_bounds = array<i64: 2, 1>, scalar_prefetch = 0 : i64, scratch_operands = 0 : i64, tpu.core_type = #tpu.core_type<tc>, window_params = [{transform_indices = @transform_0, window_bounds = array<i64: 8, 1024>}, {transform_indices = @transform_1, window_bounds = array<i64: 1024, 512>}, {transform_indices = @transform_2, window_bounds = array<i64: 1, 512>}, {transform_indices = @transform_3, window_bounds = array<i64: 8, 512>}]} {
    %c0 = arith.constant 0 : index
    %c0_0 = arith.constant 0 : index
    %0 = vector.load %arg2[%c0, %c0_0] : memref<8x1024xf32, #tpu.memory_space<vmem>>, vector<8x1024xf32>
    %c0_1 = arith.constant 0 : index
    %c0_2 = arith.constant 0 : index
    %1 = vector.load %arg3[%c0_1, %c0_2] : memref<1024x512xf32, #tpu.memory_space<vmem>>, vector<1024x512xf32>
    %cst = arith.constant dense<0.000000e+00> : vector<8x512xf32>
    %2 = tpu.matmul %0, %1, %cst {dimension_numbers = #tpu.dot_dimension_numbers<[1], [0], [0], [1], [0, 0, 1, 1], [], []>} : vector<8x1024xf32>, vector<1024x512xf32>, vector<8x512xf32> -> vector<8x512xf32>
    %c0_i32 = arith.constant 0 : i32
    %3 = arith.cmpi eq, %arg1, %c0_i32 : i32
    %4 = arith.extui %3 : i1 to i32
    %c0_i32_3 = arith.constant 0 : i32
    %5 = arith.cmpi ne, %4, %c0_i32_3 : i32
    scf.if %5 {
      %c0_8 = arith.constant 0 : index
      %c0_9 = arith.constant 0 : index
      %12 = vector.load %arg5[%c0_8, %c0_9] : memref<8x512xf32, #tpu.memory_space<vmem>>, vector<8x512xf32>
      tpu.vector_store %arg5[%c0_8, %c0_9], %2 {strides = array<i32>} : memref<8x512xf32, #tpu.memory_space<vmem>>, vector<8x512xf32>,
    } else {
    }
    %c0_i32_4 = arith.constant 0 : i32
    %6 = arith.cmpi ne, %arg1, %c0_i32_4 : i32
    %7 = arith.extui %6 : i1 to i32
    %c0_i32_5 = arith.constant 0 : i32
    %8 = arith.cmpi ne, %7, %c0_i32_5 : i32
    scf.if %8 {
      %c0_8 = arith.constant 0 : index
      %c0_9 = arith.constant 0 : index
      %12 = vector.load %arg5[%c0_8, %c0_9] : memref<8x512xf32, #tpu.memory_space<vmem>>, vector<8x512xf32>
      %13 = arith.addf %12, %2 : vector<8x512xf32>
      %c0_10 = arith.constant 0 : index
      %c0_11 = arith.constant 0 : index
      %14 = vector.load %arg5[%c0_10, %c0_11] : memref<8x512xf32, #tpu.memory_space<vmem>>, vector<8x512xf32>
      tpu.vector_store %arg5[%c0_10, %c0_11], %13 {strides = array<i32>} : memref<8x512xf32, #tpu.memory_space<vmem>>, vector<8x512xf32>,
    } else {
    }
    %c0_i32_6 = arith.constant 0 : i32
    %9 = arith.cmpi eq, %arg1, %c0_i32_6 : i32
    %10 = arith.extui %9 : i1 to i32
    %c0_i32_7 = arith.constant 0 : i32
    %11 = arith.cmpi ne, %10, %c0_i32_7 : i32
    scf.if %11 {
      %c0_8 = arith.constant 0 : index
      %c0_9 = arith.constant 0 : index
      %12 = vector.load %arg5[%c0_8, %c0_9] : memref<8x512xf32, #tpu.memory_space<vmem>>, vector<8x512xf32>
      %c0_10 = arith.constant 0 : index
      %c0_11 = arith.constant 0 : index
      %13 = vector.load %arg4[%c0_10, %c0_11] : memref<1x512xf32, #tpu.memory_space<vmem>>, vector<1x512xf32>
      %14 = vector.broadcast %13 : vector<1x512xf32> to vector<8x512xf32>
      %15 = arith.addf %12, %14 : vector<8x512xf32>
      %cst_12 = arith.constant 0.000000e+00 : f32
      %16 = vector.broadcast %cst_12 : f32 to vector<8x512xf32>
      %17 = arith.cmpf ogt, %15, %16 : vector<8x512xf32>
      %cst_13 = arith.constant 2.000000e-01 : f32
      %18 = vector.broadcast %cst_13 : f32 to vector<8x512xf32>
      %19 = arith.mulf %18, %15 : vector<8x512xf32>
      %20 = arith.select %17, %15, %19 : vector<8x512xi1>, vector<8x512xf32>
      %c0_14 = arith.constant 0 : index
      %c0_15 = arith.constant 0 : index
      %21 = vector.load %arg5[%c0_14, %c0_15] : memref<8x512xf32, #tpu.memory_space<vmem>>, vector<8x512xf32>
      tpu.vector_store %arg5[%c0_14, %c0_15], %20 {strides = array<i32>} : memref<8x512xf32, #tpu.memory_space<vmem>>, vector<8x512xf32>,
    } else {
    }
    return
  }
  func.func @transform_0(%arg0: i32, %arg1: i32) -> (i32, i32) {
    %c0_i32 = arith.constant 0 : i32
    %c0_i32_0 = arith.constant 0 : i32
    return %c0_i32, %arg1 : i32, i32
  }
  func.func @transform_1(%arg0: i32, %arg1: i32) -> (i32, i32) {
    %c0_i32 = arith.constant 0 : i32
    return %arg1, %arg0 : i32, i32
  }
  func.func @transform_2(%arg0: i32, %arg1: i32) -> (i32, i32) {
    %c0_i32 = arith.constant 0 : i32
    %c0_i32_0 = arith.constant 0 : i32
    return %c0_i32, %arg0 : i32, i32
  }
  func.func @transform_3(%arg0: i32, %arg1: i32) -> (i32, i32) {
    %c0_i32 = arith.constant 0 : i32
    %c0_i32_0 = arith.constant 0 : i32
    return %c0_i32, %arg0 : i32, i32
  }
}

</mosaic_0001>

<bundles_post_ra>
// kernel: tpu_custom_call.1
= control target key start
LH: loop header
LB: loop body
LE: loop exit
PB: predicated region body
PF: predicated region fallthrough
CT: control target
= control target key end

     0   :  { %s3155_s0 = inlined_call_operand.hbm [shape: f32[8,1024], index: 0, kind: input, shape index: {}]   ;;  %s3156_s1 = inlined_call_operand.hbm [shape: f32[1024,1024], index: 1, kind: input, shape index: {}]   ;;  %s3157_s2 = inlined_call_operand.hbm [shape: f32[1,1024], index: 2, kind: input, shape index: {}]   ;;  %s3158_s3 = inlined_call_operand.hbm [shape: f32[8,1024], index: 3, kind: output, shape index: {}]  }
   0x1   :  { %3164 = sst [smem:[#allocation12_spill]] %s3156_s1 }
   0x2   :  { %8 = vsyncpa [#allocation3], 0 }
   0x3   :  { %9 = vsyncpa [#allocation6], 0 }
   0x4   :  { %11 = vsyncpa [#allocation6 + $0x1], 0 }
   0x5   :  { %12 = vsyncpa [#allocation4], 0 }
   0x6   :  { %14 = vsyncpa [#allocation4 + $0x1], 0  ;;  %s2390_s12 = smov 0   ;;  %s2392_s13 = smov 0  }
   0x7   :  { %s2394_s14 = smov 0   ;;  %s2396_s15 = smov 0  }
   0x8   :  { %s2398_s16 = smov 0   ;;  %s2400_s17 = smov 0  }
   0x9 LB: > { %s32_s18 = sadd.s32 1, %s2357_s16  ;;  %s67_s19 = sadd.s32 1, %s2349_s14  ;;  %s2361_s17 = sphi %s2400_s17, %s20_s17   ;;  %s2357_s16 = sphi %s2398_s16, %s3184_s16   ;;  %s2353_s15 = sphi %s2396_s15, %s3183_s15   ;;  %s2349_s14 = sphi %s2394_s14, %s3182_s14   ;;  %s2345_s13 = sphi %s2392_s13, %s3181_s13   ;;  %s2341_s12 = sphi %s2390_s12, %s3180_s12  }
   0xa   : > { %p34_p0 = scmp.ge.s32.totalorder %s32_s18, 2  ;;  %p74_p1 = scmp.ne.s32.totalorder %s2349_s14, %s2345_s13 }
   0xb   : > { %p75_p2 = scmp.eq.s32.totalorder %s2361_s17, 0  ;;  %p2132_p5 = scmp.lt.s32.totalorder %s2361_s17, 2 }
   0xc   : > { %s3186_s18 = smov (%p34_p0, %s32_s18), 0  ;;  %s170_s21 = sand.u32 1, %s2361_s17  }
   0xd   : > { %p76_p4 = por %p75_p2, %p74_p1  ;;  %s63_s20 = ssub.s32 %s2357_s16, %s3186_s18 }
   0xe   : > { %p65_p6 = scmp.eq.s32.totalorder %s63_s20, 0  ;;  %s172_s22 = sand.u32 1, %s2349_s14  }
   0xf   : > { %s1579_s23 = sshll.u32 %s2357_s16, 9  ;;  %s1563_s25 = sshll.u32 %s172_s22, 12 }
  0x10   : > { %s2438_s24 = scalar_select %p65_p6, %s2349_s14, %s67_s19  }
  0x11   : > { %s3165_s1 = sld [smem:[#allocation12_spill]]  ;;  %p2447_p7 = pnand %p2132_p5, %p76_p4 }
  0x12   : > { %s174_s30 = scalar_lea.vmem [#allocation5], %s1563_s25  ;;  %s2453_s5 = scalar_lea.sflag [#allocation6], %s170_s21 }
  0x13   : > { %s184_s4 = sshll.u32 %s174_s30, 4  ;;  %p2189_p9 = pneg %p2447_p7  ;;  %s2451_s4 = int_to_ptr.vmem [resolvable:$true] %s184_s4 }
  0x17   : > { %s2445_s28 = scalar_lea.hbm %s3165_s1, %s1579_s23  ;;  %s2192_s9 = scalar_lea.hbm %s3165_s1, 131072 }
  0x18   : > { %s2187_s6 = scalar_lea.hbm %s2445_s28, 65536  ;;  %p2193_p12 = scmp.lt.u32.totalorder %s2445_s28, %s3165_s1 }
  0x19   : > { %p2188_p8 = scmp.ne.s32.totalorder %s2445_s28, %s2187_s6  ;;  %p2194_p13 = scmp.lt.u32.totalorder %s2192_s9, %s2187_s6 }
  0x1a   : > { %p2196_p2 = scmp.lt.u32.totalorder %s2187_s6, %s2445_s28 }
  0x1b   : > { %p2190_p10 = pnand %p2189_p9, %p2188_p8  ;;  %p2195_p0 = por %p2194_p13, %p2193_p12 }
  0x1d   : > { %p2191_p11 = pneg %p2190_p10  ;;  %p2197_p4 = por %p2196_p2, %p2195_p0 }
  0x1f   : > { %p2198_p5 = pnand %p2197_p4, %p2191_p11 }
  0x21   : > { %2201 = shalt.err (!%p2198_p5)
}
  0x22   : > { %s2202_s19 = scalar_lea.vmem %s2451_s4, 65536  ;;  %s2363_s20 = smov [#allocation5]  }
  0x23   : > { %p2203_p6 = scmp.ne.s32.totalorder %s2451_s4, %s2202_s19  ;;  %s2207_s21 = sshll.u32 %s2363_s20, 4  ;;  %s2208_s21 = int_to_ptr.vmem [resolvable:$false] %s2207_s21 }
  0x24   : > { %s2209_s23 = scalar_lea.vmem %s2208_s21, 131072  ;;  %p2210_p3 = scmp.lt.s32.totalorder %s2451_s4, %s2208_s21 }
  0x25   : > { %p2205_p8 = pnand %p2203_p6, %p2189_p9  ;;  %p2211_p12 = scmp.lt.s32.totalorder %s2209_s23, %s2202_s19 }
  0x27   : > { %p2206_p10 = pneg %p2205_p8  ;;  %p2212_p13 = por %p2211_p12, %p2210_p3 }
  0x29   : > { %p2213_p0 = pnand %p2212_p13, %p2206_p10 }
  0x2b   : > { %2216 = shalt.err (!%p2213_p0)
}
  0x2c   : > { %s2364_s25 = smov 1024   ;;  %s2365_s26 = smov 512  }
  0x2d   : > { %s2366_s27 = smov 32   ;;  %s2482_s30 = sadd.s32 4294967295, %s2361_s17  }
  0x2e   : > { %2123 = dma.hbm_to_vmem [thread:$0]  (!%p2447_p7), %s2445_s28, 65536, %s2451_s4, %s2453_s5, %s2364_s25, %s2365_s26, %s2366_s27  }
  0x2f   : > { %s1559_s6 = sadd.s32 4294967294, %s2361_s17   ;;  %p80_p3 = scmp.ne.s32.totalorder %s2345_s13, %s2341_s12 }
  0x30   : > { %p3159_p11 = scmp.eq.s32.totalorder %s2482_s30, 0  ;;  %p130_p2 = scmp.eq.s32.totalorder %s2482_s30, 1 }
  0x31   : > { %p136_p4 = scmp.eq.s32.totalorder %s1559_s6, 1  ;;  %p1560_p6 = scmp.ge.s32.totalorder %s2361_s17, 1 }
  0x32   : > { %p2491_p5 = por %p3159_p11, %p80_p3  ;;  %p2499_p8 = por %p130_p2, %p74_p1 }
  0x33   : > { %p2503_p10 = por %p136_p4, %p80_p3  ;;  %p143_p12 = scmp.lt.s32.totalorder %s2361_s17, 3 }
  0x34   : > { %s3167_s7 = scalar_select %p2491_p5, 1, 0 }
  0x35   : > { %s3168_s28 = scalar_select %p2499_p8, 1, 0 }
  0x36   : > { %s3169_s4 = scalar_select %p2503_p10, 1, 0 }
  0x37   : > { %s1566_s8 = sshll.u32 %s172_s22, 2  ;;  %p2510_p13 = pnand %p1560_p6, %p143_p12 }
  0x38   : > { %s2367_s10 = smov [#allocation2]   ;;  %s1580_s19 = sshll.u32 %s2357_s16, 6 }
  0x39   : > { %s3170_s9 = scalar_select %p2510_p13, 1, 0 }
  0x3a   : > { %s159_s11 = sshll.u32 %s2367_s10, 4  ;;  %p2116_p1 = pneg %p2510_p13  ;;  %s2514_s11 = int_to_ptr.vmem [resolvable:$true] %s159_s11 }
  0x3b   : > { %s2522_s23 = scalar_lea.hbm %s3157_s2, %s1580_s19  ;;  %s198_s22 = scalar_lea.vmem [#allocation7], %s1566_s8 }
  0x3c   : > { %s206_s25 = sshll.u32 %s198_s22, 4  ;;  %p2526_p0 = pnand %p2116_p1, %p3159_p11  ;;  %s207_s25 = int_to_ptr.vmem [resolvable:$true] %s206_s25 }
  0x3d   : > { %s2217_s27 = scalar_lea.hbm %s2522_s23, 64  ;;  %s2222_s19 = scalar_lea.hbm %s3157_s2, 128 }
  0x3e   : > { %s3171_s26 = scalar_select %p2526_p0, 1, 0 }
  0x3f   : > { %p2218_p3 = scmp.ne.s32.totalorder %s2522_s23, %s2217_s27  ;;  %p2223_p6 = scmp.lt.u32.totalorder %s2522_s23, %s3157_s2 }
  0x40   : > { %p2224_p12 = scmp.lt.u32.totalorder %s2222_s19, %s2217_s27  ;;  %p2226_p11 = scmp.lt.u32.totalorder %s2217_s27, %s2522_s23 }
  0x41   : > { %p2220_p2 = pnand %p2218_p3, %p2189_p9 }
  0x42   : > { %p2225_p1 = por %p2224_p12, %p2223_p6 }
  0x43   : > { %p2221_p4 = pneg %p2220_p2 }
  0x44   : > { %p2227_p10 = por %p2226_p11, %p2225_p1 }
  0x46   : > { %p2228_p8 = pnand %p2227_p10, %p2221_p4 }
  0x48   : > { %2231 = shalt.err (!%p2228_p8)
}
  0x49   : > { %s2232_s8 = scalar_lea.vmem %s207_s25, 64  ;;  %s2368_s22 = smov [#allocation7]  }
  0x4a   : > { %p2233_p5 = scmp.ne.s32.totalorder %s207_s25, %s2232_s8  ;;  %s2237_s6 = sshll.u32 %s2368_s22, 4  ;;  %s2238_s6 = int_to_ptr.vmem [resolvable:$false] %s2237_s6 }
  0x4b   : > { %s2239_s10 = scalar_lea.vmem %s2238_s6, 128  ;;  %p2240_p13 = scmp.lt.s32.totalorder %s207_s25, %s2238_s6 }
  0x4c   : > { %p2235_p3 = pnand %p2233_p5, %p2189_p9  ;;  %p2241_p0 = scmp.lt.s32.totalorder %s2239_s10, %s2232_s8 }
  0x4e   : > { %p2236_p2 = pneg %p2235_p3  ;;  %p2242_p6 = por %p2241_p0, %p2240_p13 }
  0x50   : > { %p2243_p12 = pnand %p2242_p6, %p2236_p2 }
  0x52   : > { %2246 = shalt.err (!%p2243_p12)
}
  0x53   : > { %2126 = dma.hbm_to_vmem [thread:$0]  (!%p2447_p7), %s2522_s23, 64, %s207_s25, %s2453_s5  }
  0x54   : > { %s2247_s20 = scalar_lea.hbm %s3155_s0, 1024  ;;  %p3172_p11 = scmp.ne.s32.totalorder %s3171_s26, 0 }
  0x55   : > { %p2248_p9 = scmp.ne.s32.totalorder %s3155_s0, %s2247_s20  ;;  %p2254_p13 = scmp.lt.u32.totalorder %s2247_s20, %s3155_s0 }
  0x56   : > { %p2249_p5 = pneg %p3172_p11 }
  0x58   : > { %p2250_p8 = pnand %p2249_p5, %p2248_p9 }
  0x5a   : > { %p2251_p10 = pneg %p2250_p8 }
  0x5c   : > { %p2256_p0 = pnand %p2254_p13, %p2251_p10 }
  0x5e   : > { %2259 = shalt.err (!%p2256_p0)
}
  0x5f   : > { %s2260_s29 = scalar_lea.vmem %s2514_s11, 1024  ;;  %p2268_p3 = scmp.lt.s32.totalorder %s2514_s11, %s2514_s11 }
  0x60   : > { %p2261_p7 = scmp.ne.s32.totalorder %s2514_s11, %s2260_s29  ;;  %p2269_p2 = scmp.lt.s32.totalorder %s2260_s29, %s2260_s29 }
  0x62   : > { %p2263_p4 = pnand %p2261_p7, %p2249_p5  ;;  %p2270_p6 = por %p2269_p2, %p2268_p3 }
  0x64   : > { %p2264_p1 = pneg %p2263_p4 }
  0x66   : > { %p2271_p12 = pnand %p2270_p6, %p2264_p1 }
  0x68   : > { %2274 = shalt.err (!%p2271_p12)
}
  0x69   : > { %2119 = dma.hbm_to_vmem [thread:$0]  (!%p3172_p11), %s3155_s0, 1024, %s2514_s11, [#allocation3]  }
  0x6a   : > { %p3173_p9 = scmp.ne.s32.totalorder %s3170_s9, 0 }
  0x6b   : > { %p3174_p8 = scmp.eq.s32.totalorder (!%p3173_p9), %s2482_s30, 0 }
  0x6c   : > { %215 = sbr.rel (%p3173_p9) target bundleno = 614 (0x266), region = 32 }
  0x73   : > { %2328 = dma.done.wait (%p3174_p8), [#allocation3], 1024   ;;  %p3175_p5 = pmov %p3174_p8 }
  0x74   : > { %s221_s23 = sand.u32 1, %s2482_s30   ;;  %s2579_s25 = sand.u32 1, %s2345_s13  }
  0x75   : > { %2330 = vsyncadd (%p3175_p5), [#allocation3], 4294966272  ;;  %s1571_s26 = sshll.u32 %s2579_s25, 12  ;;  %s222_s6 = scalar_lea.sflag [#allocation6], %s221_s23 }
  0x76   : > { %s2582_s10 = scalar_lea.vmem [#allocation5], %s1571_s26  ;;  %p3176_p11 = scmp.ne.s32.totalorder %s3167_s7, 0 }
  0x78   : > { %2332 = dma.done.wait (%p3176_p11), %s222_s6, 65600  }
  0x79   : > { %2334 = vsyncadd (%p3176_p11), %s222_s6, 4294901696  ;;  %v276_v0 = vld [vmem:[%s2582_s10 + $0x8] sm:$0xff]  ;;  %v278_v2 = vld [vmem:[%s2582_s10 + $0x18] sm:$0xff]  ;;  %s1572_s30 = sshll.u32 %s2579_s25, 2  ;;  %s1573_s9 = sshll.u32 %s2579_s25, 5 }
  0x7a   : > { %v280_v1 = vld [vmem:[%s2582_s10 + $0x28] sm:$0xff]  ;;  %v282_v4 = vld [vmem:[%s2582_s10 + $0x38] sm:$0xff]  ;;  %v275_v5 = vld [vmem:[%s2582_s10] sm:$0xff]  ;;  %s234_s7 = scalar_lea.vmem [#allocation7], %s1572_s30  ;;  %s1581_s11 = sshll.u32 %s2353_s15, 9 }
  0x7b   : > { %v1582_v3 = vpack.c.bf16 %v280_v1, %v276_v0  ;;  %v279_v6 = vld [vmem:[%s2582_s10 + $0x20] sm:$0xff]  ;;  %v1838_v7 = vpack.c.bf16 %v282_v4, %v278_v2  ;;  %v277_v9 = vld [vmem:[%s2582_s10 + $0x10] sm:$0xff]  ;;  %v284_v11 = vld [vmem:[%s2582_s10 + $0x48] sm:$0xff]  ;;  %s261_s27 = scalar_lea.vmem [#allocation8], %s1573_s9  ;;  %s3106_s8 = scalar_lea.hbm %s3158_s3, %s1581_s11 }
  0x7c   : > { %v1584_v8 = vpack.c.bf16 %v279_v6, %v275_v5  ;;  %v281_v10 = vld [vmem:[%s2582_s10 + $0x30] sm:$0xff]  ;;  %v288_v13 = vld [vmem:[%s2582_s10 + $0x68] sm:$0xff]  ;;  %v286_v14 = vld [vmem:[%s2582_s10 + $0x58] sm:$0xff]  ;;  %s1443_s19 = sshll.u32 %s261_s27, 4  ;;  %s1429_s15 = scalar_lea.sflag [#allocation4], %s2579_s25  ;;  %s3108_s19 = int_to_ptr.vmem [resolvable:$true] %s1443_s19 }
  0x7d   : > { %1583 = vmatprep.subr.bf16.mxu0 %v1582_v3  ;;  %v1840_v12 = vpack.c.bf16 %v281_v10, %v277_v9  ;;  %v290_v15 = vld [vmem:[%s2582_s10 + $0x78] sm:$0xff]  ;;  %1839 = vmatprep.subr.bf16.mxu1 %v1838_v7  ;;  %v1586_v16 = vpack.c.bf16 %v288_v13, %v284_v11  ;;  %v283_v18 = vld [vmem:[%s2582_s10 + $0x40] sm:$0xff]  ;;  %v285_v20 = vld [vmem:[%s2582_s10 + $0x50] sm:$0xff]  ;;  %s2275_s22 = scalar_lea.vmem %s3108_s19, 512  ;;  %p3177_p13 = scmp.ne.s32.totalorder %s3168_s28, 0 }
  0x7e   : > { %1585 = vmatpush1.bf16.msra.mxu0 %v1584_v8  ;;  %v1842_v17 = vpack.c.bf16 %v290_v15, %v286_v14  ;;  %v287_v19 = vld [vmem:[%s2582_s10 + $0x60] sm:$0xff]  ;;  %v289_v22 = vld [vmem:[%s2582_s10 + $0x70] sm:$0xff]  ;;  %v292_v23 = vld [vmem:[%s2582_s10 + $0x88] sm:$0xff]  ;;  %p2276_p10 = scmp.ne.s32.totalorder %s3108_s19, %s2275_s22  ;;  %s2369_s29 = smov [#allocation8]  }
  0x7f   : > { %1841 = vmatpush1.bf16.msra.mxu1 %v1840_v12  ;;  %v1588_v21 = vpack.c.bf16 %v287_v19, %v283_v18  ;;  %v296_v24 = vld [vmem:[%s2582_s10 + $0xa8] sm:$0xff]  ;;  %1587 = vmatprep.subr.bf16.mxu0 %v1586_v16  ;;  %v1844_v25 = vpack.c.bf16 %v289_v22, %v285_v20  ;;  %v294_v27 = vld [vmem:[%s2582_s10 + $0x98] sm:$0xff]  ;;  %v291_v29 = vld [vmem:[%s2582_s10 + $0x80] sm:$0xff]  ;;  %s2279_s1 = sshll.u32 %s2369_s29, 4  ;;  %s2280_s1 = int_to_ptr.vmem [resolvable:$false] %s2279_s1 }
  0x80   : > { %1843 = vmatprep.subr.bf16.mxu1 %v1842_v17  ;;  %v1590_v26 = vpack.c.bf16 %v296_v24, %v292_v23  ;;  %v298_v28 = vld [vmem:[%s2582_s10 + $0xb8] sm:$0xff]  ;;  %v295_v31 = vld [vmem:[%s2582_s10 + $0xa0] sm:$0xff]  ;;  %v293_v32 = vld [vmem:[%s2582_s10 + $0x90] sm:$0xff]  ;;  %p2277_p0 = pnand %p2276_p10, %p3177_p13  ;;  %s2281_s5 = scalar_lea.vmem %s2280_s1, 1024 }
  0x81   : > { %v1846_v30 = vpack.c.bf16 %v298_v28, %v294_v27  ;;  %v297_v33 = vld [vmem:[%s2582_s10 + $0xb0] sm:$0xff]  ;;  %v1592_v34 = vpack.c.bf16 %v295_v31, %v291_v29  ;;  %v300_v35 = vld [vmem:[%s2582_s10 + $0xc8] sm:$0xff]  ;;  %v302_v37 = vld [vmem:[%s2582_s10 + $0xd8] sm:$0xff]  ;;  %p2282_p4 = scmp.lt.s32.totalorder %s3108_s19, %s2280_s1  ;;  %p2283_p1 = scmp.lt.s32.totalorder %s2281_s5, %s2275_s22 }
  0x82   : > { %1589 = vmatpush1.bf16.msra.mxu0 %v1588_v21  ;;  %v304_v36 = vld [vmem:[%s2582_s10 + $0xe8] sm:$0xff]  ;;  %v1848_v38 = vpack.c.bf16 %v297_v33, %v293_v32  ;;  %v306_v40 = vld [vmem:[%s2582_s10 + $0xf8] sm:$0xff]  ;;  %v299_v41 = vld [vmem:[%s2582_s10 + $0xc0] sm:$0xff]  ;;  %p2278_p7 = pneg %p2277_p0 }
  0x83   : > { %1845 = vmatpush1.bf16.msra.mxu1 %v1844_v25  ;;  %1591 = vmatprep.subr.bf16.mxu0 %v1590_v26  ;;  %v1594_v39 = vpack.c.bf16 %v304_v36, %v300_v35  ;;  %v303_v42 = vld [vmem:[%s2582_s10 + $0xe0] sm:$0xff]  ;;  %v1850_v43 = vpack.c.bf16 %v306_v40, %v302_v37  ;;  %v301_v44 = vld [vmem:[%s2582_s10 + $0xd0] sm:$0xff]  ;;  %v308_v46 = vld [vmem:[%s2582_s10 + $0x108] sm:$0xff]  ;;  %p2284_p3 = por %p2283_p1, %p2282_p4 }
  0x84   : > { %1847 = vmatprep.subr.bf16.mxu1 %v1846_v30  ;;  %v305_v45 = vld [vmem:[%s2582_s10 + $0xf0] sm:$0xff]  ;;  %v312_v47 = vld [vmem:[%s2582_s10 + $0x128] sm:$0xff]  ;;  %v310_v48 = vld [vmem:[%s2582_s10 + $0x118] sm:$0xff]  ;;  %v1596_v50 = vpack.c.bf16 %v303_v42, %v299_v41 }
  0x85   : > { %v314_v49 = vld [vmem:[%s2582_s10 + $0x138] sm:$0xff]  ;;  %v1852_v51 = vpack.c.bf16 %v305_v45, %v301_v44  ;;  %v1598_v52 = vpack.c.bf16 %v312_v47, %v308_v46  ;;  %v307_v53 = vld [vmem:[%s2582_s10 + $0x100] sm:$0xff]  ;;  %v309_v55 = vld [vmem:[%s2582_s10 + $0x110] sm:$0xff]  ;;  %p2285_p2 = pnand %p2284_p3, %p2278_p7 }
  0x86   : > { %1593 = vmatpush1.bf16.msra.mxu0 %v1592_v34  ;;  %v311_v54 = vld [vmem:[%s2582_s10 + $0x120] sm:$0xff]  ;;  %v1854_v56 = vpack.c.bf16 %v314_v49, %v310_v48  ;;  %v313_v57 = vld [vmem:[%s2582_s10 + $0x130] sm:$0xff]  ;;  %v316_v58 = vld [vmem:[%s2582_s10 + $0x148] sm:$0xff] }
  0x87   : > { %1849 = vmatpush1.bf16.msra.mxu1 %v1848_v38  ;;  %1595 = vmatprep.subr.bf16.mxu0 %v1594_v39  ;;  %v320_v59 = vld [vmem:[%s2582_s10 + $0x168] sm:$0xff]  ;;  %v318_v60 = vld [vmem:[%s2582_s10 + $0x158] sm:$0xff]  ;;  %v1600_v62 = vpack.c.bf16 %v311_v54, %v307_v53  ;;  %v1856_v63 = vpack.c.bf16 %v313_v57, %v309_v55  ;;  %v315_v1 = vld [vmem:[%s2582_s10 + $0x140] sm:$0xff] }
  0x88   : > { %1851 = vmatprep.subr.bf16.mxu1 %v1850_v43  ;;  %v322_v61 = vld [vmem:[%s2582_s10 + $0x178] sm:$0xff]  ;;  %v1602_v0 = vpack.c.bf16 %v320_v59, %v316_v58  ;;  %v319_v2 = vld [vmem:[%s2582_s10 + $0x160] sm:$0xff]  ;;  %v317_v3 = vld [vmem:[%s2582_s10 + $0x150] sm:$0xff] }
  0x89   : > { %v1858_v4 = vpack.c.bf16 %v322_v61, %v318_v60  ;;  %v321_v5 = vld [vmem:[%s2582_s10 + $0x170] sm:$0xff]  ;;  %v324_v6 = vld [vmem:[%s2582_s10 + $0x188] sm:$0xff]  ;;  %v326_v8 = vld [vmem:[%s2582_s10 + $0x198] sm:$0xff]  ;;  %v1604_v10 = vpack.c.bf16 %v319_v2, %v315_v1 }
  0x8a   : > { %1597 = vmatpush1.bf16.msra.mxu0 %v1596_v50  ;;  %v328_v7 = vld [vmem:[%s2582_s10 + $0x1a8] sm:$0xff]  ;;  %v330_v9 = vld [vmem:[%s2582_s10 + $0x1b8] sm:$0xff]  ;;  %v1860_v11 = vpack.c.bf16 %v321_v5, %v317_v3  ;;  %v323_v13 = vld [vmem:[%s2582_s10 + $0x180] sm:$0xff] }
  0x8b   : > { %1853 = vmatpush1.bf16.msra.mxu1 %v1852_v51  ;;  %1599 = vmatprep.subr.bf16.mxu0 %v1598_v52  ;;  %v1606_v12 = vpack.c.bf16 %v328_v7, %v324_v6  ;;  %v327_v14 = vld [vmem:[%s2582_s10 + $0x1a0] sm:$0xff]  ;;  %v325_v15 = vld [vmem:[%s2582_s10 + $0x190] sm:$0xff]  ;;  %v1862_v16 = vpack.c.bf16 %v330_v9, %v326_v8  ;;  %v332_v18 = vld [vmem:[%s2582_s10 + $0x1c8] sm:$0xff] }
  0x8c   : > { %1855 = vmatprep.subr.bf16.mxu1 %v1854_v56  ;;  %v329_v17 = vld [vmem:[%s2582_s10 + $0x1b0] sm:$0xff]  ;;  %v336_v19 = vld [vmem:[%s2582_s10 + $0x1e8] sm:$0xff]  ;;  %v334_v20 = vld [vmem:[%s2582_s10 + $0x1d8] sm:$0xff]  ;;  %v1608_v22 = vpack.c.bf16 %v327_v14, %v323_v13 }
  0x8d   : > { %v338_v21 = vld [vmem:[%s2582_s10 + $0x1f8] sm:$0xff]  ;;  %v1864_v23 = vpack.c.bf16 %v329_v17, %v325_v15  ;;  %v1610_v24 = vpack.c.bf16 %v336_v19, %v332_v18  ;;  %v331_v25 = vld [vmem:[%s2582_s10 + $0x1c0] sm:$0xff]  ;;  %v333_v27 = vld [vmem:[%s2582_s10 + $0x1d0] sm:$0xff] }
  0x8e   : > { %1601 = vmatpush1.bf16.msra.mxu0 %v1600_v62  ;;  %v335_v26 = vld [vmem:[%s2582_s10 + $0x1e0] sm:$0xff]  ;;  %v1866_v28 = vpack.c.bf16 %v338_v21, %v334_v20  ;;  %v337_v29 = vld [vmem:[%s2582_s10 + $0x1f0] sm:$0xff]  ;;  %v340_v30 = vld [vmem:[%s2582_s10 + $0x208] sm:$0xff] }
  0x8f   : > { %1857 = vmatpush1.bf16.msra.mxu1 %v1856_v63  ;;  %1603 = vmatprep.subr.bf16.mxu0 %v1602_v0  ;;  %v344_v31 = vld [vmem:[%s2582_s10 + $0x228] sm:$0xff]  ;;  %v342_v32 = vld [vmem:[%s2582_s10 + $0x218] sm:$0xff]  ;;  %v1612_v34 = vpack.c.bf16 %v335_v26, %v331_v25  ;;  %v1868_v35 = vpack.c.bf16 %v337_v29, %v333_v27  ;;  %v339_v37 = vld [vmem:[%s2582_s10 + $0x200] sm:$0xff] }
  0x90   : > { %1859 = vmatprep.subr.bf16.mxu1 %v1858_v4  ;;  %v346_v33 = vld [vmem:[%s2582_s10 + $0x238] sm:$0xff]  ;;  %v1614_v36 = vpack.c.bf16 %v344_v31, %v340_v30  ;;  %v343_v38 = vld [vmem:[%s2582_s10 + $0x220] sm:$0xff]  ;;  %v341_v39 = vld [vmem:[%s2582_s10 + $0x210] sm:$0xff] }
  0x91   : > { %v1870_v40 = vpack.c.bf16 %v346_v33, %v342_v32  ;;  %v345_v41 = vld [vmem:[%s2582_s10 + $0x230] sm:$0xff]  ;;  %v348_v42 = vld [vmem:[%s2582_s10 + $0x248] sm:$0xff]  ;;  %v350_v44 = vld [vmem:[%s2582_s10 + $0x258] sm:$0xff]  ;;  %v1616_v46 = vpack.c.bf16 %v343_v38, %v339_v37 }
  0x92   : > { %1605 = vmatpush1.bf16.msra.mxu0 %v1604_v10  ;;  %v352_v43 = vld [vmem:[%s2582_s10 + $0x268] sm:$0xff]  ;;  %v354_v45 = vld [vmem:[%s2582_s10 + $0x278] sm:$0xff]  ;;  %v1872_v47 = vpack.c.bf16 %v345_v41, %v341_v39  ;;  %v347_v49 = vld [vmem:[%s2582_s10 + $0x240] sm:$0xff] }
  0x93   : > { %1861 = vmatpush1.bf16.msra.mxu1 %v1860_v11  ;;  %1607 = vmatprep.subr.bf16.mxu0 %v1606_v12  ;;  %v1618_v48 = vpack.c.bf16 %v352_v43, %v348_v42  ;;  %v351_v50 = vld [vmem:[%s2582_s10 + $0x260] sm:$0xff]  ;;  %v349_v51 = vld [vmem:[%s2582_s10 + $0x250] sm:$0xff]  ;;  %v1874_v52 = vpack.c.bf16 %v354_v45, %v350_v44  ;;  %v356_v54 = vld [vmem:[%s2582_s10 + $0x288] sm:$0xff] }
  0x94   : > { %1863 = vmatprep.subr.bf16.mxu1 %v1862_v16  ;;  %v353_v53 = vld [vmem:[%s2582_s10 + $0x270] sm:$0xff]  ;;  %v360_v55 = vld [vmem:[%s2582_s10 + $0x2a8] sm:$0xff]  ;;  %v358_v56 = vld [vmem:[%s2582_s10 + $0x298] sm:$0xff]  ;;  %v1620_v58 = vpack.c.bf16 %v351_v50, %v347_v49 }
  0x95   : > { %v362_v57 = vld [vmem:[%s2582_s10 + $0x2b8] sm:$0xff]  ;;  %v1876_v59 = vpack.c.bf16 %v353_v53, %v349_v51  ;;  %v1622_v60 = vpack.c.bf16 %v360_v55, %v356_v54  ;;  %v355_v61 = vld [vmem:[%s2582_s10 + $0x280] sm:$0xff]  ;;  %v357_v63 = vld [vmem:[%s2582_s10 + $0x290] sm:$0xff] }
  0x96   : > { %1609 = vmatpush1.bf16.msra.mxu0 %v1608_v22  ;;  %v359_v62 = vld [vmem:[%s2582_s10 + $0x2a0] sm:$0xff]  ;;  %v1878_v0 = vpack.c.bf16 %v362_v57, %v358_v56  ;;  %v361_v1 = vld [vmem:[%s2582_s10 + $0x2b0] sm:$0xff]  ;;  %v364_v2 = vld [vmem:[%s2582_s10 + $0x2c8] sm:$0xff] }
  0x97   : > { %1865 = vmatpush1.bf16.msra.mxu1 %v1864_v23  ;;  %1611 = vmatprep.subr.bf16.mxu0 %v1610_v24  ;;  %v368_v3 = vld [vmem:[%s2582_s10 + $0x2e8] sm:$0xff]  ;;  %v366_v4 = vld [vmem:[%s2582_s10 + $0x2d8] sm:$0xff]  ;;  %v1624_v6 = vpack.c.bf16 %v359_v62, %v355_v61  ;;  %v363_v7 = vld [vmem:[%s2582_s10 + $0x2c0] sm:$0xff]  ;;  %v1880_v8 = vpack.c.bf16 %v361_v1, %v357_v63 }
  0x98   : > { %1867 = vmatprep.subr.bf16.mxu1 %v1866_v28  ;;  %v370_v5 = vld [vmem:[%s2582_s10 + $0x2f8] sm:$0xff]  ;;  %v1626_v9 = vpack.c.bf16 %v368_v3, %v364_v2  ;;  %v367_v10 = vld [vmem:[%s2582_s10 + $0x2e0] sm:$0xff]  ;;  %v365_v11 = vld [vmem:[%s2582_s10 + $0x2d0] sm:$0xff] }
  0x99   : > { %v369_v12 = vld [vmem:[%s2582_s10 + $0x2f0] sm:$0xff]  ;;  %v1882_v13 = vpack.c.bf16 %v370_v5, %v366_v4  ;;  %v372_v14 = vld [vmem:[%s2582_s10 + $0x308] sm:$0xff]  ;;  %v374_v17 = vld [vmem:[%s2582_s10 + $0x318] sm:$0xff]  ;;  %v1628_v19 = vpack.c.bf16 %v367_v10, %v363_v7 }
  0x9a   : > { %1613 = vmatpush1.bf16.msra.mxu0 %v1612_v34  ;;  %v376_v15 = vld [vmem:[%s2582_s10 + $0x328] sm:$0xff]  ;;  %v378_v18 = vld [vmem:[%s2582_s10 + $0x338] sm:$0xff]  ;;  %v1884_v20 = vpack.c.bf16 %v369_v12, %v365_v11  ;;  %v371_v22 = vld [vmem:[%s2582_s10 + $0x300] sm:$0xff] }
  0x9b   : > { %1869 = vmatpush1.bf16.msra.mxu1 %v1868_v35  ;;  %1615 = vmatprep.subr.bf16.mxu0 %v1614_v36  ;;  %v268_v16 = vld [vmem:[#allocation2 + $0x8] sm:$0xff]  ;;  %v1630_v21 = vpack.c.bf16 %v376_v15, %v372_v14  ;;  %v375_v23 = vld [vmem:[%s2582_s10 + $0x320] sm:$0xff]  ;;  %v373_v24 = vld [vmem:[%s2582_s10 + $0x310] sm:$0xff]  ;;  %v1886_v25 = vpack.c.bf16 %v378_v18, %v374_v17 }
  0x9c   : > { %1871 = vmatprep.subr.bf16.mxu1 %v1870_v40  ;;  %851 = vmatprep.mubr.f32.mxu0 %v268_v16  ;;  %v377_v26 = vld [vmem:[%s2582_s10 + $0x330] sm:$0xff]  ;;  %v380_v27 = vld [vmem:[%s2582_s10 + $0x348] sm:$0xff]  ;;  %v382_v29 = vld [vmem:[%s2582_s10 + $0x358] sm:$0xff]  ;;  %v1632_v31 = vpack.c.bf16 %v375_v23, %v371_v22 }
  0x9d   : > { %1135 = vmatprep.mubr.f32.mxu1 %v268_v16  ;;  %v384_v28 = vld [vmem:[%s2582_s10 + $0x368] sm:$0xff]  ;;  %v386_v30 = vld [vmem:[%s2582_s10 + $0x378] sm:$0xff]  ;;  %v1888_v32 = vpack.c.bf16 %v377_v26, %v373_v24  ;;  %v379_v34 = vld [vmem:[%s2582_s10 + $0x340] sm:$0xff] }
  0x9e   : > { %1617 = vmatpush1.bf16.msra.mxu0 %v1616_v46  ;;  %v1634_v33 = vpack.c.bf16 %v384_v28, %v380_v27  ;;  %v383_v35 = vld [vmem:[%s2582_s10 + $0x360] sm:$0xff]  ;;  %v381_v36 = vld [vmem:[%s2582_s10 + $0x350] sm:$0xff]  ;;  %v1890_v37 = vpack.c.bf16 %v386_v30, %v382_v29  ;;  %v388_v39 = vld [vmem:[%s2582_s10 + $0x388] sm:$0xff] }
  0x9f   : > { %1873 = vmatpush1.bf16.msra.mxu1 %v1872_v47  ;;  %1619 = vmatprep.subr.bf16.mxu0 %v1618_v48  ;;  %v385_v38 = vld [vmem:[%s2582_s10 + $0x370] sm:$0xff]  ;;  %v392_v40 = vld [vmem:[%s2582_s10 + $0x3a8] sm:$0xff]  ;;  %v390_v41 = vld [vmem:[%s2582_s10 + $0x398] sm:$0xff]  ;;  %v1636_v43 = vpack.c.bf16 %v383_v35, %v379_v34 }
  0xa0   : > { %1875 = vmatprep.subr.bf16.mxu1 %v1874_v52  ;;  %v394_v42 = vld [vmem:[%s2582_s10 + $0x3b8] sm:$0xff]  ;;  %v1892_v44 = vpack.c.bf16 %v385_v38, %v381_v36  ;;  %v1638_v45 = vpack.c.bf16 %v392_v40, %v388_v39  ;;  %v387_v46 = vld [vmem:[%s2582_s10 + $0x380] sm:$0xff]  ;;  %v389_v48 = vld [vmem:[%s2582_s10 + $0x390] sm:$0xff] }
  0xa1   : > { %v391_v47 = vld [vmem:[%s2582_s10 + $0x3a0] sm:$0xff]  ;;  %v1894_v49 = vpack.c.bf16 %v394_v42, %v390_v41  ;;  %v393_v50 = vld [vmem:[%s2582_s10 + $0x3b0] sm:$0xff]  ;;  %v396_v51 = vld [vmem:[%s2582_s10 + $0x3c8] sm:$0xff] }
  0xa2   : > { %1621 = vmatpush1.bf16.msra.mxu0 %v1620_v58  ;;  %v400_v52 = vld [vmem:[%s2582_s10 + $0x3e8] sm:$0xff]  ;;  %v398_v53 = vld [vmem:[%s2582_s10 + $0x3d8] sm:$0xff]  ;;  %v1640_v55 = vpack.c.bf16 %v391_v47, %v387_v46  ;;  %v1896_v56 = vpack.c.bf16 %v393_v50, %v389_v48  ;;  %v395_v58 = vld [vmem:[%s2582_s10 + $0x3c0] sm:$0xff] }
  0xa3   : > { %1877 = vmatpush1.bf16.msra.mxu1 %v1876_v59  ;;  %1623 = vmatprep.subr.bf16.mxu0 %v1622_v60  ;;  %v402_v54 = vld [vmem:[%s2582_s10 + $0x3f8] sm:$0xff]  ;;  %v1642_v57 = vpack.c.bf16 %v400_v52, %v396_v51  ;;  %v399_v59 = vld [vmem:[%s2582_s10 + $0x3e0] sm:$0xff]  ;;  %v397_v60 = vld [vmem:[%s2582_s10 + $0x3d0] sm:$0xff] }
  0xa4   : > { %1879 = vmatprep.subr.bf16.mxu1 %v1878_v0  ;;  %v1898_v61 = vpack.c.bf16 %v402_v54, %v398_v53  ;;  %v401_v62 = vld [vmem:[%s2582_s10 + $0x3f0] sm:$0xff]  ;;  %v404_v63 = vld [vmem:[%s2582_s10 + $0x408] sm:$0xff]  ;;  %v406_v1 = vld [vmem:[%s2582_s10 + $0x418] sm:$0xff]  ;;  %v1644_v3 = vpack.c.bf16 %v399_v59, %v395_v58 }
  0xa5   : > { %v408_v0 = vld [vmem:[%s2582_s10 + $0x428] sm:$0xff]  ;;  %v410_v2 = vld [vmem:[%s2582_s10 + $0x438] sm:$0xff]  ;;  %v1900_v4 = vpack.c.bf16 %v401_v62, %v397_v60  ;;  %v407_v7 = vld [vmem:[%s2582_s10 + $0x420] sm:$0xff] }
  0xa6   : > { %1625 = vmatpush1.bf16.msra.mxu0 %v1624_v6  ;;  %v1646_v5 = vpack.c.bf16 %v408_v0, %v404_v63  ;;  %v403_v6 = vld [vmem:[%s2582_s10 + $0x400] sm:$0xff]  ;;  %v409_v10 = vld [vmem:[%s2582_s10 + $0x430] sm:$0xff]  ;;  %v412_v11 = vld [vmem:[%s2582_s10 + $0x448] sm:$0xff] }
  0xa7   : > { %1881 = vmatpush1.bf16.msra.mxu1 %v1880_v8  ;;  %1627 = vmatprep.subr.bf16.mxu0 %v1626_v9  ;;  %v405_v8 = vld [vmem:[%s2582_s10 + $0x410] sm:$0xff]  ;;  %v1902_v9 = vpack.c.bf16 %v410_v2, %v406_v1  ;;  %v416_v12 = vld [vmem:[%s2582_s10 + $0x468] sm:$0xff]  ;;  %v418_v14 = vld [vmem:[%s2582_s10 + $0x478] sm:$0xff]  ;;  %v1648_v16 = vpack.c.bf16 %v407_v7, %v403_v6 }
  0xa8   : > { %1883 = vmatprep.subr.bf16.mxu1 %v1882_v13  ;;  %v414_v13 = vld [vmem:[%s2582_s10 + $0x458] sm:$0xff]  ;;  %v267_v15 = vld [vmem:[#allocation2] sm:$0xff]  ;;  %v1904_v17 = vpack.c.bf16 %v409_v10, %v405_v8  ;;  %v1650_v18 = vpack.c.bf16 %v416_v12, %v412_v11  ;;  %v417_v23 = vld [vmem:[%s2582_s10 + $0x470] sm:$0xff] }
  0xa9   : > { %v1906_v22 = vpack.c.bf16 %v418_v14, %v414_v13  ;;  %v420_v24 = vld [vmem:[%s2582_s10 + $0x488] sm:$0xff]  ;;  %v422_v26 = vld [vmem:[%s2582_s10 + $0x498] sm:$0xff]  ;;  %v425_v35 = vld [vmem:[%s2582_s10 + $0x4b0] sm:$0xff] }
  0xaa   : > { %1629 = vmatpush1.bf16.msra.mxu0 %v1628_v19  ;;  %v411_v19 = vld [vmem:[%s2582_s10 + $0x440] sm:$0xff]  ;;  %v426_v27 = vld [vmem:[%s2582_s10 + $0x4b8] sm:$0xff]  ;;  %v428_v36 = vld [vmem:[%s2582_s10 + $0x4c8] sm:$0xff] }
  0xab   : > { %1885 = vmatpush1.bf16.msra.mxu1 %v1884_v20  ;;  %1631 = vmatprep.subr.bf16.mxu0 %v1630_v21  ;;  %v415_v20 = vld [vmem:[%s2582_s10 + $0x460] sm:$0xff]  ;;  %v413_v21 = vld [vmem:[%s2582_s10 + $0x450] sm:$0xff]  ;;  %v1910_v34 = vpack.c.bf16 %v426_v27, %v422_v26  ;;  %v430_v38 = vld [vmem:[%s2582_s10 + $0x4d8] sm:$0xff] }
  0xac   : > { %1887 = vmatprep.subr.bf16.mxu1 %v1886_v25  ;;  %v424_v25 = vld [vmem:[%s2582_s10 + $0x4a8] sm:$0xff]  ;;  %v1652_v28 = vpack.c.bf16 %v415_v20, %v411_v19  ;;  %v1908_v29 = vpack.c.bf16 %v417_v23, %v413_v21  ;;  %v434_v39 = vld [vmem:[%s2582_s10 + $0x4f8] sm:$0xff]  ;;  %v433_v47 = vld [vmem:[%s2582_s10 + $0x4f0] sm:$0xff] }
  0xad   : > { %v1654_v30 = vpack.c.bf16 %v424_v25, %v420_v24  ;;  %v1914_v46 = vpack.c.bf16 %v434_v39, %v430_v38  ;;  %v436_v48 = vld [vmem:[%s2582_s10 + $0x508] sm:$0xff]  ;;  %v438_v50 = vld [vmem:[%s2582_s10 + $0x518] sm:$0xff]  ;;  %v441_v59 = vld [vmem:[%s2582_s10 + $0x530] sm:$0xff] }
  0xae   : > { %1633 = vmatpush1.bf16.msra.mxu0 %v1632_v31  ;;  %v419_v31 = vld [vmem:[%s2582_s10 + $0x480] sm:$0xff]  ;;  %v442_v51 = vld [vmem:[%s2582_s10 + $0x538] sm:$0xff]  ;;  %v444_v60 = vld [vmem:[%s2582_s10 + $0x548] sm:$0xff] }
  0xaf   : > { %1889 = vmatpush1.bf16.msra.mxu1 %v1888_v32  ;;  %1635 = vmatprep.subr.bf16.mxu0 %v1634_v33  ;;  %v423_v32 = vld [vmem:[%s2582_s10 + $0x4a0] sm:$0xff]  ;;  %v421_v33 = vld [vmem:[%s2582_s10 + $0x490] sm:$0xff]  ;;  %v1918_v58 = vpack.c.bf16 %v442_v51, %v438_v50  ;;  %v446_v62 = vld [vmem:[%s2582_s10 + $0x558] sm:$0xff] }
  0xb0   : > { %1891 = vmatprep.subr.bf16.mxu1 %v1890_v37  ;;  %v432_v37 = vld [vmem:[%s2582_s10 + $0x4e8] sm:$0xff]  ;;  %v1656_v40 = vpack.c.bf16 %v423_v32, %v419_v31  ;;  %v1912_v41 = vpack.c.bf16 %v425_v35, %v421_v33  ;;  %v450_v63 = vld [vmem:[%s2582_s10 + $0x578] sm:$0xff]  ;;  %v449_v7 = vld [vmem:[%s2582_s10 + $0x570] sm:$0xff] }
  0xb1   : > { %v1658_v42 = vpack.c.bf16 %v432_v37, %v428_v36  ;;  %v1922_v6 = vpack.c.bf16 %v450_v63, %v446_v62  ;;  %v452_v8 = vld [vmem:[%s2582_s10 + $0x588] sm:$0xff]  ;;  %v454_v10 = vld [vmem:[%s2582_s10 + $0x598] sm:$0xff]  ;;  %v451_v13 = vld [vmem:[%s2582_s10 + $0x580] sm:$0xff] }
  0xb2   : > { %1637 = vmatpush1.bf16.msra.mxu0 %v1636_v43  ;;  %v427_v43 = vld [vmem:[%s2582_s10 + $0x4c0] sm:$0xff]  ;;  %v458_v11 = vld [vmem:[%s2582_s10 + $0x5b8] sm:$0xff]  ;;  %v460_v20 = vld [vmem:[%s2582_s10 + $0x5c8] sm:$0xff] }
  0xb3   : > { %1893 = vmatpush1.bf16.msra.mxu1 %v1892_v44  ;;  %1639 = vmatprep.subr.bf16.mxu0 %v1638_v45  ;;  %v431_v44 = vld [vmem:[%s2582_s10 + $0x4e0] sm:$0xff]  ;;  %v429_v45 = vld [vmem:[%s2582_s10 + $0x4d0] sm:$0xff]  ;;  %v1926_v19 = vpack.c.bf16 %v458_v11, %v454_v10  ;;  %v464_v21 = vld [vmem:[%s2582_s10 + $0x5e8] sm:$0xff] }
  0xb4   : > { %1895 = vmatprep.subr.bf16.mxu1 %v1894_v49  ;;  %v440_v49 = vld [vmem:[%s2582_s10 + $0x528] sm:$0xff]  ;;  %v1660_v52 = vpack.c.bf16 %v431_v44, %v427_v43  ;;  %v1916_v53 = vpack.c.bf16 %v433_v47, %v429_v45  ;;  %v462_v23 = vld [vmem:[%s2582_s10 + $0x5d8] sm:$0xff]  ;;  %v1674_v27 = vpack.c.bf16 %v464_v21, %v460_v20  ;;  %v465_v32 = vld [vmem:[%s2582_s10 + $0x5f0] sm:$0xff] }
  0xb5   : > { %v1662_v54 = vpack.c.bf16 %v440_v49, %v436_v48  ;;  %v466_v24 = vld [vmem:[%s2582_s10 + $0x5f8] sm:$0xff]  ;;  %v468_v33 = vld [vmem:[%s2582_s10 + $0x608] sm:$0xff]  ;;  %v473_v44 = vld [vmem:[%s2582_s10 + $0x630] sm:$0xff] }
  0xb6   : > { %1641 = vmatpush1.bf16.msra.mxu0 %v1640_v55  ;;  %v435_v55 = vld [vmem:[%s2582_s10 + $0x500] sm:$0xff]  ;;  %v1930_v31 = vpack.c.bf16 %v466_v24, %v462_v23  ;;  %v470_v35 = vld [vmem:[%s2582_s10 + $0x618] sm:$0xff]  ;;  %v476_v45 = vld [vmem:[%s2582_s10 + $0x648] sm:$0xff] }
  0xb7   : > { %1897 = vmatpush1.bf16.msra.mxu1 %v1896_v56  ;;  %1643 = vmatprep.subr.bf16.mxu0 %v1642_v57  ;;  %v439_v56 = vld [vmem:[%s2582_s10 + $0x520] sm:$0xff]  ;;  %v437_v57 = vld [vmem:[%s2582_s10 + $0x510] sm:$0xff]  ;;  %v474_v36 = vld [vmem:[%s2582_s10 + $0x638] sm:$0xff] }
  0xb8   : > { %1899 = vmatprep.subr.bf16.mxu1 %v1898_v61  ;;  %v448_v61 = vld [vmem:[%s2582_s10 + $0x568] sm:$0xff]  ;;  %v1664_v0 = vpack.c.bf16 %v439_v56, %v435_v55  ;;  %v1920_v1 = vpack.c.bf16 %v441_v59, %v437_v57  ;;  %v1934_v43 = vpack.c.bf16 %v474_v36, %v470_v35  ;;  %v478_v47 = vld [vmem:[%s2582_s10 + $0x658] sm:$0xff]  ;;  %v481_v56 = vld [vmem:[%s2582_s10 + $0x670] sm:$0xff] }
  0xb9   : > { %v1666_v2 = vpack.c.bf16 %v448_v61, %v444_v60  ;;  %v482_v48 = vld [vmem:[%s2582_s10 + $0x678] sm:$0xff]  ;;  %v484_v57 = vld [vmem:[%s2582_s10 + $0x688] sm:$0xff]  ;;  %v499_v24 = vld [vmem:[%s2582_s10 + $0x700] sm:$0xff] }
  0xba   : > { %1645 = vmatpush1.bf16.msra.mxu0 %v1644_v3  ;;  %v443_v3 = vld [vmem:[%s2582_s10 + $0x540] sm:$0xff]  ;;  %v1938_v55 = vpack.c.bf16 %v482_v48, %v478_v47  ;;  %v486_v59 = vld [vmem:[%s2582_s10 + $0x698] sm:$0xff] }
  0xbb   : > { %1901 = vmatpush1.bf16.msra.mxu1 %v1900_v4  ;;  %1647 = vmatprep.subr.bf16.mxu0 %v1646_v5  ;;  %v447_v4 = vld [vmem:[%s2582_s10 + $0x560] sm:$0xff]  ;;  %v445_v5 = vld [vmem:[%s2582_s10 + $0x550] sm:$0xff]  ;;  %v490_v60 = vld [vmem:[%s2582_s10 + $0x6b8] sm:$0xff] }
  0xbc   : > { %1903 = vmatprep.subr.bf16.mxu1 %v1902_v9  ;;  %v456_v9 = vld [vmem:[%s2582_s10 + $0x5a8] sm:$0xff]  ;;  %v1668_v12 = vpack.c.bf16 %v447_v4, %v443_v3  ;;  %v1924_v14 = vpack.c.bf16 %v449_v7, %v445_v5  ;;  %v1942_v3 = vpack.c.bf16 %v490_v60, %v486_v59  ;;  %v489_v4 = vld [vmem:[%s2582_s10 + $0x6b0] sm:$0xff]  ;;  %v494_v7 = vld [vmem:[%s2582_s10 + $0x6d8] sm:$0xff] }
  0xbd   : > { %852 = vmatmul.mubr.f32.vlgmr.msra.gmra.mrb[0].mxu0 %v267_v15  ;;  %v492_v5 = vld [vmem:[%s2582_s10 + $0x6c8] sm:$0xff]  ;;  %v506_v20 = vld [vmem:[%s2582_s10 + $0x738] sm:$0xff]  ;;  %v507_v36 = vld [vmem:[%s2582_s10 + $0x740] sm:$0xff] }
  0xbe   : > { %1649 = vmatpush1.bf16.msra.mxu0 %v1648_v16  ;;  %1136 = vmatmul.mubr.f32.vlgmr.msra.gmra.mrb[0].mxu1 %v267_v15  ;;  %v1670_v15 = vpack.c.bf16 %v456_v9, %v452_v8  ;;  %v455_v16 = vld [vmem:[%s2582_s10 + $0x5a0] sm:$0xff]  ;;  %v498_v8 = vld [vmem:[%s2582_s10 + $0x6f8] sm:$0xff] }
  0xbf   : > { %1905 = vmatpush1.bf16.msra.mxu1 %v1904_v17  ;;  %1651 = vmatprep.subr.bf16.mxu0 %v1650_v18  ;;  %v453_v17 = vld [vmem:[%s2582_s10 + $0x590] sm:$0xff]  ;;  %v1672_v25 = vpack.c.bf16 %v455_v16, %v451_v13  ;;  %v495_v13 = vld [vmem:[%s2582_s10 + $0x6e0] sm:$0xff] }
  0xc0   : > { %1907 = vmatprep.subr.bf16.mxu1 %v1906_v22  ;;  %v457_v18 = vld [vmem:[%s2582_s10 + $0x5b0] sm:$0xff]  ;;  %v270_v22 = vld [vmem:[#allocation2 + $0x18] sm:$0xff]  ;;  %v515_v48 = vld [vmem:[%s2582_s10 + $0x780] sm:$0xff] }
  0xc1   : > { %922 = vmatprep.mubr.f32.mxu0 %v270_v22  ;;  %1206 = vmatprep.mubr.f32.mxu1 %v270_v22  ;;  %v1928_v26 = vpack.c.bf16 %v457_v18, %v453_v17  ;;  %v497_v16 = vld [vmem:[%s2582_s10 + $0x6f0] sm:$0xff]  ;;  %v500_v17 = vld [vmem:[%s2582_s10 + $0x708] sm:$0xff]  ;;  %v523_v60 = vld [vmem:[%s2582_s10 + $0x7c0] sm:$0xff] }
  0xc2   : > { %1653 = vmatpush1.bf16.msra.mxu0 %v1652_v28  ;;  %v459_v28 = vld [vmem:[%s2582_s10 + $0x5c0] sm:$0xff]  ;;  %v504_v18 = vld [vmem:[%s2582_s10 + $0x728] sm:$0xff] }
  0xc3   : > { %1909 = vmatpush1.bf16.msra.mxu1 %v1908_v29  ;;  %1655 = vmatprep.subr.bf16.mxu0 %v1654_v30  ;;  %v463_v29 = vld [vmem:[%s2582_s10 + $0x5e0] sm:$0xff]  ;;  %v461_v30 = vld [vmem:[%s2582_s10 + $0x5d0] sm:$0xff]  ;;  %v1694_v23 = vpack.c.bf16 %v504_v18, %v500_v17 }
  0xc4   : > { %1911 = vmatprep.subr.bf16.mxu1 %v1910_v34  ;;  %v472_v34 = vld [vmem:[%s2582_s10 + $0x628] sm:$0xff]  ;;  %v1676_v37 = vpack.c.bf16 %v463_v29, %v459_v28  ;;  %v1932_v38 = vpack.c.bf16 %v465_v32, %v461_v30  ;;  %v505_v28 = vld [vmem:[%s2582_s10 + $0x730] sm:$0xff]  ;;  %v514_v32 = vld [vmem:[%s2582_s10 + $0x778] sm:$0xff] }
  0xc5   : > { %v1678_v39 = vpack.c.bf16 %v472_v34, %v468_v33  ;;  %v508_v29 = vld [vmem:[%s2582_s10 + $0x748] sm:$0xff]  ;;  %v269_v17 = vld [vmem:[#allocation2 + $0x10] sm:$0xff] }
  0xc6   : > { %1657 = vmatpush1.bf16.msra.mxu0 %v1656_v40  ;;  %v467_v40 = vld [vmem:[%s2582_s10 + $0x600] sm:$0xff]  ;;  %v512_v30 = vld [vmem:[%s2582_s10 + $0x768] sm:$0xff] }
  0xc7   : > { %1913 = vmatpush1.bf16.msra.mxu1 %v1912_v41  ;;  %1659 = vmatprep.subr.bf16.mxu0 %v1658_v42  ;;  %v471_v41 = vld [vmem:[%s2582_s10 + $0x620] sm:$0xff]  ;;  %v469_v42 = vld [vmem:[%s2582_s10 + $0x610] sm:$0xff]  ;;  %v1698_v35 = vpack.c.bf16 %v512_v30, %v508_v29  ;;  %v554_v29 = vld [vmem:[%s2582_s10 + $0x8b8] sm:$0xff] }
  0xc8   : > { %1915 = vmatprep.subr.bf16.mxu1 %v1914_v46  ;;  %v480_v46 = vld [vmem:[%s2582_s10 + $0x668] sm:$0xff]  ;;  %v1680_v49 = vpack.c.bf16 %v471_v41, %v467_v40  ;;  %v1936_v50 = vpack.c.bf16 %v473_v44, %v469_v42  ;;  %v513_v40 = vld [vmem:[%s2582_s10 + $0x770] sm:$0xff]  ;;  %v522_v44 = vld [vmem:[%s2582_s10 + $0x7b8] sm:$0xff] }
  0xc9   : > { %v1682_v51 = vpack.c.bf16 %v480_v46, %v476_v45  ;;  %v516_v41 = vld [vmem:[%s2582_s10 + $0x788] sm:$0xff] }
  0xca   : > { %1661 = vmatpush1.bf16.msra.mxu0 %v1660_v52  ;;  %v475_v52 = vld [vmem:[%s2582_s10 + $0x640] sm:$0xff]  ;;  %v520_v42 = vld [vmem:[%s2582_s10 + $0x7a8] sm:$0xff] }
  0xcb   : > { %1917 = vmatpush1.bf16.msra.mxu1 %v1916_v53  ;;  %1663 = vmatprep.subr.bf16.mxu0 %v1662_v54  ;;  %v479_v53 = vld [vmem:[%s2582_s10 + $0x660] sm:$0xff]  ;;  %v477_v54 = vld [vmem:[%s2582_s10 + $0x650] sm:$0xff]  ;;  %v1702_v47 = vpack.c.bf16 %v520_v42, %v516_v41  ;;  %v272_v30 = vld [vmem:[#allocation2 + $0x28] sm:$0xff] }
  0xcc   : > { %1919 = vmatprep.subr.bf16.mxu1 %v1918_v58  ;;  %v488_v58 = vld [vmem:[%s2582_s10 + $0x6a8] sm:$0xff]  ;;  %v1684_v61 = vpack.c.bf16 %v479_v53, %v475_v52  ;;  %v1940_v62 = vpack.c.bf16 %v481_v56, %v477_v54  ;;  %v521_v52 = vld [vmem:[%s2582_s10 + $0x7b0] sm:$0xff]  ;;  %v530_v56 = vld [vmem:[%s2582_s10 + $0x7f8] sm:$0xff] }
  0xcd   : > { %v1686_v63 = vpack.c.bf16 %v488_v58, %v484_v57  ;;  %v524_v53 = vld [vmem:[%s2582_s10 + $0x7c8] sm:$0xff]  ;;  %v558_v41 = vld [vmem:[%s2582_s10 + $0x8d8] sm:$0xff] }
  0xce   : > { %1665 = vmatpush1.bf16.msra.mxu0 %v1664_v0  ;;  %v483_v0 = vld [vmem:[%s2582_s10 + $0x680] sm:$0xff]  ;;  %v528_v54 = vld [vmem:[%s2582_s10 + $0x7e8] sm:$0xff]  ;;  %v562_v42 = vld [vmem:[%s2582_s10 + $0x8f8] sm:$0xff] }
  0xcf   : > { %1921 = vmatpush1.bf16.msra.mxu1 %v1920_v1  ;;  %1667 = vmatprep.subr.bf16.mxu0 %v1666_v2  ;;  %v487_v1 = vld [vmem:[%s2582_s10 + $0x6a0] sm:$0xff]  ;;  %v485_v2 = vld [vmem:[%s2582_s10 + $0x690] sm:$0xff]  ;;  %v1706_v59 = vpack.c.bf16 %v528_v54, %v524_v53  ;;  %v566_v53 = vld [vmem:[%s2582_s10 + $0x918] sm:$0xff] }
  0xd0   : > { %1923 = vmatprep.subr.bf16.mxu1 %v1922_v6  ;;  %v496_v6 = vld [vmem:[%s2582_s10 + $0x6e8] sm:$0xff]  ;;  %v1688_v9 = vpack.c.bf16 %v487_v1, %v483_v0  ;;  %v1944_v10 = vpack.c.bf16 %v489_v4, %v485_v2  ;;  %v529_v0 = vld [vmem:[%s2582_s10 + $0x7f0] sm:$0xff]  ;;  %v538_v4 = vld [vmem:[%s2582_s10 + $0x838] sm:$0xff] }
  0xd1   : > { %v1690_v11 = vpack.c.bf16 %v496_v6, %v492_v5  ;;  %v532_v1 = vld [vmem:[%s2582_s10 + $0x808] sm:$0xff]  ;;  %v570_v54 = vld [vmem:[%s2582_s10 + $0x938] sm:$0xff] }
  0xd2   : > { %1669 = vmatpush1.bf16.msra.mxu0 %v1668_v12  ;;  %v491_v12 = vld [vmem:[%s2582_s10 + $0x6c0] sm:$0xff]  ;;  %v536_v2 = vld [vmem:[%s2582_s10 + $0x828] sm:$0xff] }
  0xd3   : > { %1925 = vmatpush1.bf16.msra.mxu1 %v1924_v14  ;;  %1671 = vmatprep.subr.bf16.mxu0 %v1670_v15  ;;  %v493_v14 = vld [vmem:[%s2582_s10 + $0x6d0] sm:$0xff]  ;;  %v1946_v15 = vpack.c.bf16 %v498_v8, %v494_v7  ;;  %v1692_v21 = vpack.c.bf16 %v495_v13, %v491_v12  ;;  %v1710_v7 = vpack.c.bf16 %v536_v2, %v532_v1  ;;  %v531_v8 = vld [vmem:[%s2582_s10 + $0x800] sm:$0xff]  ;;  %v540_v13 = vld [vmem:[%s2582_s10 + $0x848] sm:$0xff] }
  0xd4   : > { %1927 = vmatprep.subr.bf16.mxu1 %v1926_v19  ;;  %v502_v19 = vld [vmem:[%s2582_s10 + $0x718] sm:$0xff]  ;;  %v1948_v22 = vpack.c.bf16 %v497_v16, %v493_v14  ;;  %v537_v12 = vld [vmem:[%s2582_s10 + $0x830] sm:$0xff]  ;;  %v544_v14 = vld [vmem:[%s2582_s10 + $0x868] sm:$0xff] }
  0xd5   : > { %v546_v16 = vld [vmem:[%s2582_s10 + $0x878] sm:$0xff] }
  0xd6   : > { %1673 = vmatpush1.bf16.msra.mxu0 %v1672_v25  ;;  %v503_v25 = vld [vmem:[%s2582_s10 + $0x720] sm:$0xff]  ;;  %v574_v1 = vld [vmem:[%s2582_s10 + $0x958] sm:$0xff] }
  0xd7   : > { %1929 = vmatpush1.bf16.msra.mxu1 %v1928_v26  ;;  %1675 = vmatprep.subr.bf16.mxu0 %v1674_v27  ;;  %v501_v26 = vld [vmem:[%s2582_s10 + $0x710] sm:$0xff]  ;;  %v1950_v27 = vpack.c.bf16 %v506_v20, %v502_v19  ;;  %v1696_v33 = vpack.c.bf16 %v503_v25, %v499_v24  ;;  %v1714_v20 = vpack.c.bf16 %v544_v14, %v540_v13  ;;  %v578_v2 = vld [vmem:[%s2582_s10 + $0x978] sm:$0xff] }
  0xd8   : > { %1931 = vmatprep.subr.bf16.mxu1 %v1930_v31  ;;  %v510_v31 = vld [vmem:[%s2582_s10 + $0x758] sm:$0xff]  ;;  %v1952_v34 = vpack.c.bf16 %v505_v28, %v501_v26  ;;  %v545_v25 = vld [vmem:[%s2582_s10 + $0x870] sm:$0xff]  ;;  %v548_v26 = vld [vmem:[%s2582_s10 + $0x888] sm:$0xff] }
  0xd9   : > { %v550_v28 = vld [vmem:[%s2582_s10 + $0x898] sm:$0xff] }
  0xda   : > { %1677 = vmatpush1.bf16.msra.mxu0 %v1676_v37  ;;  %v511_v37 = vld [vmem:[%s2582_s10 + $0x760] sm:$0xff]  ;;  %v582_v13 = vld [vmem:[%s2582_s10 + $0x998] sm:$0xff] }
  0xdb   : > { %1933 = vmatpush1.bf16.msra.mxu1 %v1932_v38  ;;  %1679 = vmatprep.subr.bf16.mxu0 %v1678_v39  ;;  %v509_v38 = vld [vmem:[%s2582_s10 + $0x750] sm:$0xff]  ;;  %v1954_v39 = vpack.c.bf16 %v514_v32, %v510_v31  ;;  %v1700_v45 = vpack.c.bf16 %v511_v37, %v507_v36  ;;  %v1974_v37 = vpack.c.bf16 %v554_v29, %v550_v28  ;;  %v586_v14 = vld [vmem:[%s2582_s10 + $0x9b8] sm:$0xff] }
  0xdc   : > { %1935 = vmatprep.subr.bf16.mxu1 %v1934_v43  ;;  %v518_v43 = vld [vmem:[%s2582_s10 + $0x798] sm:$0xff]  ;;  %v1956_v46 = vpack.c.bf16 %v513_v40, %v509_v38  ;;  %v549_v36 = vld [vmem:[%s2582_s10 + $0x890] sm:$0xff]  ;;  %v560_v40 = vld [vmem:[%s2582_s10 + $0x8e8] sm:$0xff] }
  0xdd   : > { %v553_v38 = vld [vmem:[%s2582_s10 + $0x8b0] sm:$0xff] }
  0xde   : > { %1681 = vmatpush1.bf16.msra.mxu0 %v1680_v49  ;;  %v519_v49 = vld [vmem:[%s2582_s10 + $0x7a0] sm:$0xff] }
  0xdf   : > { %1937 = vmatpush1.bf16.msra.mxu1 %v1936_v50  ;;  %1683 = vmatprep.subr.bf16.mxu0 %v1682_v51  ;;  %v517_v50 = vld [vmem:[%s2582_s10 + $0x790] sm:$0xff]  ;;  %v1958_v51 = vpack.c.bf16 %v522_v44, %v518_v43  ;;  %v1704_v57 = vpack.c.bf16 %v519_v49, %v515_v48  ;;  %v1976_v44 = vpack.c.bf16 %v553_v38, %v549_v36  ;;  %v600_v36 = vld [vmem:[%s2582_s10 + $0xa28] sm:$0xff]  ;;  %v602_v38 = vld [vmem:[%s2582_s10 + $0xa38] sm:$0xff] }
  0xe0   : > { %1939 = vmatprep.subr.bf16.mxu1 %v1938_v55  ;;  %v526_v55 = vld [vmem:[%s2582_s10 + $0x7d8] sm:$0xff]  ;;  %v1960_v58 = vpack.c.bf16 %v521_v52, %v517_v50  ;;  %v557_v48 = vld [vmem:[%s2582_s10 + $0x8d0] sm:$0xff]  ;;  %v1978_v49 = vpack.c.bf16 %v562_v42, %v558_v41  ;;  %v568_v52 = vld [vmem:[%s2582_s10 + $0x928] sm:$0xff] }
  0xe1   : > { %v561_v50 = vld [vmem:[%s2582_s10 + $0x8f0] sm:$0xff]  ;;  %v595_v42 = vld [vmem:[%s2582_s10 + $0xa00] sm:$0xff] }
  0xe2   : > { %1685 = vmatpush1.bf16.msra.mxu0 %v1684_v61  ;;  %v527_v61 = vld [vmem:[%s2582_s10 + $0x7e0] sm:$0xff] }
  0xe3   : > { %1941 = vmatpush1.bf16.msra.mxu1 %v1940_v62  ;;  %1687 = vmatprep.subr.bf16.mxu0 %v1686_v63  ;;  %v525_v62 = vld [vmem:[%s2582_s10 + $0x7d0] sm:$0xff]  ;;  %v1962_v63 = vpack.c.bf16 %v530_v56, %v526_v55  ;;  %v1708_v5 = vpack.c.bf16 %v527_v61, %v523_v60  ;;  %v1980_v56 = vpack.c.bf16 %v561_v50, %v557_v48  ;;  %v608_v48 = vld [vmem:[%s2582_s10 + $0xa68] sm:$0xff]  ;;  %v610_v50 = vld [vmem:[%s2582_s10 + $0xa78] sm:$0xff] }
  0xe4   : > { %1943 = vmatprep.subr.bf16.mxu1 %v1942_v3  ;;  %v534_v3 = vld [vmem:[%s2582_s10 + $0x818] sm:$0xff]  ;;  %v1964_v6 = vpack.c.bf16 %v529_v0, %v525_v62  ;;  %v565_v60 = vld [vmem:[%s2582_s10 + $0x910] sm:$0xff]  ;;  %v1982_v61 = vpack.c.bf16 %v570_v54, %v566_v53  ;;  %v576_v0 = vld [vmem:[%s2582_s10 + $0x968] sm:$0xff] }
  0xe5   : > { %v569_v62 = vld [vmem:[%s2582_s10 + $0x930] sm:$0xff]  ;;  %v603_v54 = vld [vmem:[%s2582_s10 + $0xa40] sm:$0xff] }
  0xe6   : > { %1689 = vmatpush1.bf16.msra.mxu0 %v1688_v9  ;;  %v535_v9 = vld [vmem:[%s2582_s10 + $0x820] sm:$0xff] }
  0xe7   : > { %1945 = vmatpush1.bf16.msra.mxu1 %v1944_v10  ;;  %1691 = vmatprep.subr.bf16.mxu0 %v1690_v11  ;;  %v533_v10 = vld [vmem:[%s2582_s10 + $0x810] sm:$0xff]  ;;  %v1966_v11 = vpack.c.bf16 %v538_v4, %v534_v3  ;;  %v1712_v18 = vpack.c.bf16 %v535_v9, %v531_v8  ;;  %v1984_v4 = vpack.c.bf16 %v569_v62, %v565_v60  ;;  %v616_v60 = vld [vmem:[%s2582_s10 + $0xaa8] sm:$0xff]  ;;  %v618_v62 = vld [vmem:[%s2582_s10 + $0xab8] sm:$0xff] }
  0xe8   : > { %1947 = vmatprep.subr.bf16.mxu1 %v1946_v15  ;;  %v542_v15 = vld [vmem:[%s2582_s10 + $0x858] sm:$0xff]  ;;  %v1968_v19 = vpack.c.bf16 %v537_v12, %v533_v10  ;;  %v573_v8 = vld [vmem:[%s2582_s10 + $0x950] sm:$0xff]  ;;  %v1986_v9 = vpack.c.bf16 %v578_v2, %v574_v1  ;;  %v584_v12 = vld [vmem:[%s2582_s10 + $0x9a8] sm:$0xff] }
  0xe9   : > { %v1970_v24 = vpack.c.bf16 %v546_v16, %v542_v15  ;;  %v577_v10 = vld [vmem:[%s2582_s10 + $0x970] sm:$0xff]  ;;  %v611_v2 = vld [vmem:[%s2582_s10 + $0xa80] sm:$0xff] }
  0xea   : > { %1693 = vmatpush1.bf16.msra.mxu0 %v1692_v21  ;;  %v539_v21 = vld [vmem:[%s2582_s10 + $0x840] sm:$0xff]  ;;  %v1988_v16 = vpack.c.bf16 %v577_v10, %v573_v8  ;;  %v624_v8 = vld [vmem:[%s2582_s10 + $0xae8] sm:$0xff]  ;;  %v626_v10 = vld [vmem:[%s2582_s10 + $0xaf8] sm:$0xff] }
  0xeb   : > { %1949 = vmatpush1.bf16.msra.mxu1 %v1948_v22  ;;  %1695 = vmatprep.subr.bf16.mxu0 %v1694_v23  ;;  %v543_v22 = vld [vmem:[%s2582_s10 + $0x860] sm:$0xff]  ;;  %v541_v23 = vld [vmem:[%s2582_s10 + $0x850] sm:$0xff] }
  0xec   : > { %1951 = vmatprep.subr.bf16.mxu1 %v1950_v27  ;;  %v552_v27 = vld [vmem:[%s2582_s10 + $0x8a8] sm:$0xff]  ;;  %v1716_v31 = vpack.c.bf16 %v543_v22, %v539_v21  ;;  %v1972_v32 = vpack.c.bf16 %v545_v25, %v541_v23  ;;  %v1990_v21 = vpack.c.bf16 %v586_v14, %v582_v13  ;;  %v585_v22 = vld [vmem:[%s2582_s10 + $0x9b0] sm:$0xff]  ;;  %v590_v25 = vld [vmem:[%s2582_s10 + $0x9d8] sm:$0xff] }
  0xed   : > { %v588_v23 = vld [vmem:[%s2582_s10 + $0x9c8] sm:$0xff]  ;;  %v619_v14 = vld [vmem:[%s2582_s10 + $0xac0] sm:$0xff] }
  0xee   : > { %1697 = vmatpush1.bf16.msra.mxu0 %v1696_v33  ;;  %v1718_v33 = vpack.c.bf16 %v552_v27, %v548_v26  ;;  %v594_v26 = vld [vmem:[%s2582_s10 + $0x9f8] sm:$0xff] }
  0xef   : > { %1953 = vmatpush1.bf16.msra.mxu1 %v1952_v34  ;;  %1699 = vmatprep.subr.bf16.mxu0 %v1698_v35  ;;  %v547_v34 = vld [vmem:[%s2582_s10 + $0x880] sm:$0xff] }
  0xf0   : > { %1955 = vmatprep.subr.bf16.mxu1 %v1954_v39  ;;  %v551_v35 = vld [vmem:[%s2582_s10 + $0x8a0] sm:$0xff]  ;;  %v556_v39 = vld [vmem:[%s2582_s10 + $0x8c8] sm:$0xff] }
  0xf1   : > { %v1720_v43 = vpack.c.bf16 %v551_v35, %v547_v34  ;;  %v593_v34 = vld [vmem:[%s2582_s10 + $0x9f0] sm:$0xff]  ;;  %v596_v35 = vld [vmem:[%s2582_s10 + $0xa08] sm:$0xff] }
  0xf2   : > { %1701 = vmatpush1.bf16.msra.mxu0 %v1700_v45  ;;  %v1722_v45 = vpack.c.bf16 %v560_v40, %v556_v39  ;;  %v1742_v41 = vpack.c.bf16 %v600_v36, %v596_v35 }
  0xf3   : > { %1957 = vmatpush1.bf16.msra.mxu1 %v1956_v46  ;;  %1703 = vmatprep.subr.bf16.mxu0 %v1702_v47  ;;  %v555_v46 = vld [vmem:[%s2582_s10 + $0x8c0] sm:$0xff] }
  0xf4   : > { %1959 = vmatprep.subr.bf16.mxu1 %v1958_v51  ;;  %v559_v47 = vld [vmem:[%s2582_s10 + $0x8e0] sm:$0xff]  ;;  %v564_v51 = vld [vmem:[%s2582_s10 + $0x908] sm:$0xff] }
  0xf5   : > { %v1724_v55 = vpack.c.bf16 %v559_v47, %v555_v46  ;;  %v601_v46 = vld [vmem:[%s2582_s10 + $0xa30] sm:$0xff]  ;;  %v604_v47 = vld [vmem:[%s2582_s10 + $0xa48] sm:$0xff] }
  0xf6   : > { %1705 = vmatpush1.bf16.msra.mxu0 %v1704_v57  ;;  %v1726_v57 = vpack.c.bf16 %v568_v52, %v564_v51  ;;  %v1746_v53 = vpack.c.bf16 %v608_v48, %v604_v47 }
  0xf7   : > { %1961 = vmatpush1.bf16.msra.mxu1 %v1960_v58  ;;  %1707 = vmatprep.subr.bf16.mxu0 %v1706_v59  ;;  %v563_v58 = vld [vmem:[%s2582_s10 + $0x900] sm:$0xff] }
  0xf8   : > { %1963 = vmatprep.subr.bf16.mxu1 %v1962_v63  ;;  %v567_v59 = vld [vmem:[%s2582_s10 + $0x920] sm:$0xff]  ;;  %v572_v63 = vld [vmem:[%s2582_s10 + $0x948] sm:$0xff] }
  0xf9   : > { %v1728_v3 = vpack.c.bf16 %v567_v59, %v563_v58  ;;  %v609_v58 = vld [vmem:[%s2582_s10 + $0xa70] sm:$0xff]  ;;  %v612_v59 = vld [vmem:[%s2582_s10 + $0xa88] sm:$0xff] }
  0xfa   : > { %1709 = vmatpush1.bf16.msra.mxu0 %v1708_v5  ;;  %v1730_v5 = vpack.c.bf16 %v576_v0, %v572_v63  ;;  %v1750_v1 = vpack.c.bf16 %v616_v60, %v612_v59 }
  0xfb   : > { %1965 = vmatpush1.bf16.msra.mxu1 %v1964_v6  ;;  %1711 = vmatprep.subr.bf16.mxu0 %v1710_v7  ;;  %v571_v6 = vld [vmem:[%s2582_s10 + $0x940] sm:$0xff] }
  0xfc   : > { %1967 = vmatprep.subr.bf16.mxu1 %v1966_v11  ;;  %v575_v7 = vld [vmem:[%s2582_s10 + $0x960] sm:$0xff]  ;;  %v580_v11 = vld [vmem:[%s2582_s10 + $0x988] sm:$0xff] }
  0xfd   : > { %923 = vmatmul.mubr.f32.vlgmr.msra.gmra.mrb[0].mxu0 %v269_v17  ;;  %v1732_v15 = vpack.c.bf16 %v575_v7, %v571_v6  ;;  %v617_v6 = vld [vmem:[%s2582_s10 + $0xab0] sm:$0xff]  ;;  %v620_v7 = vld [vmem:[%s2582_s10 + $0xac8] sm:$0xff] }
  0xfe   : > { %1713 = vmatpush1.bf16.msra.mxu0 %v1712_v18  ;;  %1207 = vmatmul.mubr.f32.vlgmr.msra.gmra.mrb[0].mxu1 %v269_v17  ;;  %v1734_v17 = vpack.c.bf16 %v584_v12, %v580_v11  ;;  %v579_v18 = vld [vmem:[%s2582_s10 + $0x980] sm:$0xff]  ;;  %v1754_v13 = vpack.c.bf16 %v624_v8, %v620_v7 }
  0xff   : > { %1969 = vmatpush1.bf16.msra.mxu1 %v1968_v19  ;;  %1715 = vmatprep.subr.bf16.mxu0 %v1714_v20  ;;  %v583_v19 = vld [vmem:[%s2582_s10 + $0x9a0] sm:$0xff]  ;;  %v581_v20 = vld [vmem:[%s2582_s10 + $0x990] sm:$0xff] }
 0x100   : > { %1971 = vmatprep.subr.bf16.mxu1 %v1970_v24  ;;  %993 = vmatprep.mubr.f32.mxu0 %v272_v30  ;;  %v592_v24 = vld [vmem:[%s2582_s10 + $0x9e8] sm:$0xff]  ;;  %v1736_v27 = vpack.c.bf16 %v583_v19, %v579_v18  ;;  %v1992_v28 = vpack.c.bf16 %v585_v22, %v581_v20  ;;  %v625_v18 = vld [vmem:[%s2582_s10 + $0xaf0] sm:$0xff]  ;;  %v634_v22 = vld [vmem:[%s2582_s10 + $0xb38] sm:$0xff] }
 0x101   : > { %1277 = vmatprep.mubr.f32.mxu1 %v272_v30  ;;  %v1738_v29 = vpack.c.bf16 %v592_v24, %v588_v23  ;;  %v587_v30 = vld [vmem:[%s2582_s10 + $0x9c0] sm:$0xff]  ;;  %v628_v19 = vld [vmem:[%s2582_s10 + $0xb08] sm:$0xff] }
 0x102   : > { %1717 = vmatpush1.bf16.msra.mxu0 %v1716_v31  ;;  %v591_v31 = vld [vmem:[%s2582_s10 + $0x9e0] sm:$0xff]  ;;  %v632_v20 = vld [vmem:[%s2582_s10 + $0xb28] sm:$0xff] }
 0x103   : > { %1973 = vmatpush1.bf16.msra.mxu1 %v1972_v32  ;;  %1719 = vmatprep.subr.bf16.mxu0 %v1718_v33  ;;  %v589_v32 = vld [vmem:[%s2582_s10 + $0x9d0] sm:$0xff]  ;;  %v1994_v33 = vpack.c.bf16 %v594_v26, %v590_v25  ;;  %v1740_v39 = vpack.c.bf16 %v591_v31, %v587_v30  ;;  %v1758_v25 = vpack.c.bf16 %v632_v20, %v628_v19  ;;  %v627_v26 = vld [vmem:[%s2582_s10 + $0xb00] sm:$0xff]  ;;  %v636_v31 = vld [vmem:[%s2582_s10 + $0xb48] sm:$0xff] }
 0x104   : > { %1975 = vmatprep.subr.bf16.mxu1 %v1974_v37  ;;  %v598_v37 = vld [vmem:[%s2582_s10 + $0xa18] sm:$0xff]  ;;  %v1996_v40 = vpack.c.bf16 %v593_v34, %v589_v32  ;;  %v633_v30 = vld [vmem:[%s2582_s10 + $0xb30] sm:$0xff]  ;;  %v640_v32 = vld [vmem:[%s2582_s10 + $0xb68] sm:$0xff] }
 0x105   : > { %v642_v34 = vld [vmem:[%s2582_s10 + $0xb78] sm:$0xff]  ;;  %v271_v19 = vld [vmem:[#allocation2 + $0x20] sm:$0xff] }
 0x106   : > { %1721 = vmatpush1.bf16.msra.mxu0 %v1720_v43  ;;  %v599_v43 = vld [vmem:[%s2582_s10 + $0xa20] sm:$0xff] }
 0x107   : > { %1977 = vmatpush1.bf16.msra.mxu1 %v1976_v44  ;;  %1723 = vmatprep.subr.bf16.mxu0 %v1722_v45  ;;  %v597_v44 = vld [vmem:[%s2582_s10 + $0xa10] sm:$0xff]  ;;  %v1998_v45 = vpack.c.bf16 %v602_v38, %v598_v37  ;;  %v1744_v51 = vpack.c.bf16 %v599_v43, %v595_v42  ;;  %v1762_v37 = vpack.c.bf16 %v640_v32, %v636_v31  ;;  %v635_v38 = vld [vmem:[%s2582_s10 + $0xb40] sm:$0xff]  ;;  %v644_v43 = vld [vmem:[%s2582_s10 + $0xb88] sm:$0xff] }
 0x108   : > { %1979 = vmatprep.subr.bf16.mxu1 %v1978_v49  ;;  %v606_v49 = vld [vmem:[%s2582_s10 + $0xa58] sm:$0xff]  ;;  %v2000_v52 = vpack.c.bf16 %v601_v46, %v597_v44  ;;  %v641_v42 = vld [vmem:[%s2582_s10 + $0xb70] sm:$0xff]  ;;  %v648_v44 = vld [vmem:[%s2582_s10 + $0xba8] sm:$0xff] }
 0x109   : > { %v650_v46 = vld [vmem:[%s2582_s10 + $0xbb8] sm:$0xff] }
 0x10a   : > { %1725 = vmatpush1.bf16.msra.mxu0 %v1724_v55  ;;  %v607_v55 = vld [vmem:[%s2582_s10 + $0xa60] sm:$0xff]  ;;  %v682_v31 = vld [vmem:[%s2582_s10 + $0xcb8] sm:$0xff] }
 0x10b   : > { %1981 = vmatpush1.bf16.msra.mxu1 %v1980_v56  ;;  %1727 = vmatprep.subr.bf16.mxu0 %v1726_v57  ;;  %v605_v56 = vld [vmem:[%s2582_s10 + $0xa50] sm:$0xff]  ;;  %v2002_v57 = vpack.c.bf16 %v610_v50, %v606_v49  ;;  %v1748_v63 = vpack.c.bf16 %v607_v55, %v603_v54  ;;  %v1766_v49 = vpack.c.bf16 %v648_v44, %v644_v43  ;;  %v643_v50 = vld [vmem:[%s2582_s10 + $0xb80] sm:$0xff]  ;;  %v652_v55 = vld [vmem:[%s2582_s10 + $0xbc8] sm:$0xff] }
 0x10c   : > { %1983 = vmatprep.subr.bf16.mxu1 %v1982_v61  ;;  %v614_v61 = vld [vmem:[%s2582_s10 + $0xa98] sm:$0xff]  ;;  %v2004_v0 = vpack.c.bf16 %v609_v58, %v605_v56  ;;  %v649_v54 = vld [vmem:[%s2582_s10 + $0xbb0] sm:$0xff]  ;;  %v656_v56 = vld [vmem:[%s2582_s10 + $0xbe8] sm:$0xff] }
 0x10d   : > { %v658_v58 = vld [vmem:[%s2582_s10 + $0xbf8] sm:$0xff] }
 0x10e   : > { %1729 = vmatpush1.bf16.msra.mxu0 %v1728_v3  ;;  %v615_v3 = vld [vmem:[%s2582_s10 + $0xaa0] sm:$0xff]  ;;  %v274_v32 = vld [vmem:[#allocation2 + $0x38] sm:$0xff] }
 0x10f   : > { %1985 = vmatpush1.bf16.msra.mxu1 %v1984_v4  ;;  %1731 = vmatprep.subr.bf16.mxu0 %v1730_v5  ;;  %v613_v4 = vld [vmem:[%s2582_s10 + $0xa90] sm:$0xff]  ;;  %v2006_v5 = vpack.c.bf16 %v618_v62, %v614_v61  ;;  %v1752_v11 = vpack.c.bf16 %v615_v3, %v611_v2  ;;  %v1770_v61 = vpack.c.bf16 %v656_v56, %v652_v55  ;;  %v651_v62 = vld [vmem:[%s2582_s10 + $0xbc0] sm:$0xff]  ;;  %v660_v3 = vld [vmem:[%s2582_s10 + $0xc08] sm:$0xff] }
 0x110   : > { %1987 = vmatprep.subr.bf16.mxu1 %v1986_v9  ;;  %v622_v9 = vld [vmem:[%s2582_s10 + $0xad8] sm:$0xff]  ;;  %v2008_v12 = vpack.c.bf16 %v617_v6, %v613_v4  ;;  %v657_v2 = vld [vmem:[%s2582_s10 + $0xbf0] sm:$0xff]  ;;  %v664_v4 = vld [vmem:[%s2582_s10 + $0xc28] sm:$0xff] }
 0x111   : > { %v666_v6 = vld [vmem:[%s2582_s10 + $0xc38] sm:$0xff] }
 0x112   : > { %1733 = vmatpush1.bf16.msra.mxu0 %v1732_v15  ;;  %v623_v15 = vld [vmem:[%s2582_s10 + $0xae0] sm:$0xff]  ;;  %v686_v43 = vld [vmem:[%s2582_s10 + $0xcd8] sm:$0xff] }
 0x113   : > { %1989 = vmatpush1.bf16.msra.mxu1 %v1988_v16  ;;  %1735 = vmatprep.subr.bf16.mxu0 %v1734_v17  ;;  %v621_v16 = vld [vmem:[%s2582_s10 + $0xad0] sm:$0xff]  ;;  %v2010_v17 = vpack.c.bf16 %v626_v10, %v622_v9  ;;  %v1756_v23 = vpack.c.bf16 %v623_v15, %v619_v14  ;;  %v1774_v9 = vpack.c.bf16 %v664_v4, %v660_v3  ;;  %v659_v10 = vld [vmem:[%s2582_s10 + $0xc00] sm:$0xff]  ;;  %v668_v15 = vld [vmem:[%s2582_s10 + $0xc48] sm:$0xff] }
 0x114   : > { %1991 = vmatprep.subr.bf16.mxu1 %v1990_v21  ;;  %v630_v21 = vld [vmem:[%s2582_s10 + $0xb18] sm:$0xff]  ;;  %v2012_v24 = vpack.c.bf16 %v625_v18, %v621_v16  ;;  %v665_v14 = vld [vmem:[%s2582_s10 + $0xc30] sm:$0xff]  ;;  %v672_v16 = vld [vmem:[%s2582_s10 + $0xc68] sm:$0xff] }
 0x115   : > { %v674_v18 = vld [vmem:[%s2582_s10 + $0xc78] sm:$0xff] }
 0x116   : > { %1737 = vmatpush1.bf16.msra.mxu0 %v1736_v27  ;;  %v631_v27 = vld [vmem:[%s2582_s10 + $0xb20] sm:$0xff]  ;;  %v690_v44 = vld [vmem:[%s2582_s10 + $0xcf8] sm:$0xff] }
 0x117   : > { %1993 = vmatpush1.bf16.msra.mxu1 %v1992_v28  ;;  %1739 = vmatprep.subr.bf16.mxu0 %v1738_v29  ;;  %v629_v28 = vld [vmem:[%s2582_s10 + $0xb10] sm:$0xff]  ;;  %v2014_v29 = vpack.c.bf16 %v634_v22, %v630_v21  ;;  %v1760_v35 = vpack.c.bf16 %v631_v27, %v627_v26  ;;  %v1778_v22 = vpack.c.bf16 %v672_v16, %v668_v15  ;;  %v694_v55 = vld [vmem:[%s2582_s10 + $0xd18] sm:$0xff] }
 0x118   : > { %1995 = vmatprep.subr.bf16.mxu1 %v1994_v33  ;;  %v638_v33 = vld [vmem:[%s2582_s10 + $0xb58] sm:$0xff]  ;;  %v2016_v36 = vpack.c.bf16 %v633_v30, %v629_v28  ;;  %v673_v27 = vld [vmem:[%s2582_s10 + $0xc70] sm:$0xff]  ;;  %v676_v28 = vld [vmem:[%s2582_s10 + $0xc88] sm:$0xff] }
 0x119   : > { %v678_v30 = vld [vmem:[%s2582_s10 + $0xc98] sm:$0xff] }
 0x11a   : > { %1741 = vmatpush1.bf16.msra.mxu0 %v1740_v39  ;;  %v639_v39 = vld [vmem:[%s2582_s10 + $0xb60] sm:$0xff]  ;;  %v698_v56 = vld [vmem:[%s2582_s10 + $0xd38] sm:$0xff] }
 0x11b   : > { %1997 = vmatpush1.bf16.msra.mxu1 %v1996_v40  ;;  %1743 = vmatprep.subr.bf16.mxu0 %v1742_v41  ;;  %v637_v40 = vld [vmem:[%s2582_s10 + $0xb50] sm:$0xff]  ;;  %v2018_v41 = vpack.c.bf16 %v642_v34, %v638_v33  ;;  %v1764_v47 = vpack.c.bf16 %v639_v39, %v635_v38  ;;  %v2038_v39 = vpack.c.bf16 %v682_v31, %v678_v30  ;;  %v702_v3 = vld [vmem:[%s2582_s10 + $0xd58] sm:$0xff] }
 0x11c   : > { %1999 = vmatprep.subr.bf16.mxu1 %v1998_v45  ;;  %v646_v45 = vld [vmem:[%s2582_s10 + $0xb98] sm:$0xff]  ;;  %v2020_v48 = vpack.c.bf16 %v641_v42, %v637_v40  ;;  %v677_v38 = vld [vmem:[%s2582_s10 + $0xc90] sm:$0xff]  ;;  %v688_v42 = vld [vmem:[%s2582_s10 + $0xce8] sm:$0xff] }
 0x11d   : > { %v681_v40 = vld [vmem:[%s2582_s10 + $0xcb0] sm:$0xff]  ;;  %v706_v4 = vld [vmem:[%s2582_s10 + $0xd78] sm:$0xff] }
 0x11e   : > { %1745 = vmatpush1.bf16.msra.mxu0 %v1744_v51  ;;  %v647_v51 = vld [vmem:[%s2582_s10 + $0xba0] sm:$0xff]  ;;  %v710_v15 = vld [vmem:[%s2582_s10 + $0xd98] sm:$0xff] }
 0x11f   : > { %2001 = vmatpush1.bf16.msra.mxu1 %v2000_v52  ;;  %1747 = vmatprep.subr.bf16.mxu0 %v1746_v53  ;;  %v645_v52 = vld [vmem:[%s2582_s10 + $0xb90] sm:$0xff]  ;;  %v2022_v53 = vpack.c.bf16 %v650_v46, %v646_v45  ;;  %v1768_v59 = vpack.c.bf16 %v647_v51, %v643_v50  ;;  %v2040_v46 = vpack.c.bf16 %v681_v40, %v677_v38  ;;  %v714_v16 = vld [vmem:[%s2582_s10 + $0xdb8] sm:$0xff]  ;;  %v728_v38 = vld [vmem:[%s2582_s10 + $0xe28] sm:$0xff] }
 0x120   : > { %2003 = vmatprep.subr.bf16.mxu1 %v2002_v57  ;;  %v654_v57 = vld [vmem:[%s2582_s10 + $0xbd8] sm:$0xff]  ;;  %v2024_v60 = vpack.c.bf16 %v649_v54, %v645_v52  ;;  %v685_v50 = vld [vmem:[%s2582_s10 + $0xcd0] sm:$0xff]  ;;  %v2042_v51 = vpack.c.bf16 %v690_v44, %v686_v43  ;;  %v696_v54 = vld [vmem:[%s2582_s10 + $0xd28] sm:$0xff] }
 0x121   : > { %v689_v52 = vld [vmem:[%s2582_s10 + $0xcf0] sm:$0xff]  ;;  %v730_v40 = vld [vmem:[%s2582_s10 + $0xe38] sm:$0xff]  ;;  %v723_v44 = vld [vmem:[%s2582_s10 + $0xe00] sm:$0xff] }
 0x122   : > { %1749 = vmatpush1.bf16.msra.mxu0 %v1748_v63  ;;  %v655_v63 = vld [vmem:[%s2582_s10 + $0xbe0] sm:$0xff] }
 0x123   : > { %2005 = vmatpush1.bf16.msra.mxu1 %v2004_v0  ;;  %1751 = vmatprep.subr.bf16.mxu0 %v1750_v1  ;;  %v653_v0 = vld [vmem:[%s2582_s10 + $0xbd0] sm:$0xff]  ;;  %v2026_v1 = vpack.c.bf16 %v658_v58, %v654_v57  ;;  %v1772_v7 = vpack.c.bf16 %v655_v63, %v651_v62  ;;  %v2044_v58 = vpack.c.bf16 %v689_v52, %v685_v50  ;;  %v736_v50 = vld [vmem:[%s2582_s10 + $0xe68] sm:$0xff]  ;;  %v738_v52 = vld [vmem:[%s2582_s10 + $0xe78] sm:$0xff] }
 0x124   : > { %2007 = vmatprep.subr.bf16.mxu1 %v2006_v5  ;;  %v662_v5 = vld [vmem:[%s2582_s10 + $0xc18] sm:$0xff]  ;;  %v2028_v8 = vpack.c.bf16 %v657_v2, %v653_v0  ;;  %v693_v62 = vld [vmem:[%s2582_s10 + $0xd10] sm:$0xff]  ;;  %v2046_v63 = vpack.c.bf16 %v698_v56, %v694_v55  ;;  %v704_v2 = vld [vmem:[%s2582_s10 + $0xd68] sm:$0xff] }
 0x125   : > { %v697_v0 = vld [vmem:[%s2582_s10 + $0xd30] sm:$0xff]  ;;  %v731_v56 = vld [vmem:[%s2582_s10 + $0xe40] sm:$0xff] }
 0x126   : > { %1753 = vmatpush1.bf16.msra.mxu0 %v1752_v11  ;;  %v663_v11 = vld [vmem:[%s2582_s10 + $0xc20] sm:$0xff] }
 0x127   : > { %2009 = vmatpush1.bf16.msra.mxu1 %v2008_v12  ;;  %1755 = vmatprep.subr.bf16.mxu0 %v1754_v13  ;;  %v661_v12 = vld [vmem:[%s2582_s10 + $0xc10] sm:$0xff]  ;;  %v2030_v13 = vpack.c.bf16 %v666_v6, %v662_v5  ;;  %v1776_v20 = vpack.c.bf16 %v663_v11, %v659_v10  ;;  %v2048_v6 = vpack.c.bf16 %v697_v0, %v693_v62  ;;  %v744_v62 = vld [vmem:[%s2582_s10 + $0xea8] sm:$0xff]  ;;  %v746_v0 = vld [vmem:[%s2582_s10 + $0xeb8] sm:$0xff] }
 0x128   : > { %2011 = vmatprep.subr.bf16.mxu1 %v2010_v17  ;;  %v670_v17 = vld [vmem:[%s2582_s10 + $0xc58] sm:$0xff]  ;;  %v2032_v21 = vpack.c.bf16 %v665_v14, %v661_v12  ;;  %v701_v10 = vld [vmem:[%s2582_s10 + $0xd50] sm:$0xff]  ;;  %v2050_v11 = vpack.c.bf16 %v706_v4, %v702_v3  ;;  %v712_v14 = vld [vmem:[%s2582_s10 + $0xda8] sm:$0xff] }
 0x129   : > { %v2034_v26 = vpack.c.bf16 %v674_v18, %v670_v17  ;;  %v705_v12 = vld [vmem:[%s2582_s10 + $0xd70] sm:$0xff]  ;;  %v739_v4 = vld [vmem:[%s2582_s10 + $0xe80] sm:$0xff] }
 0x12a   : > { %1757 = vmatpush1.bf16.msra.mxu0 %v1756_v23  ;;  %v667_v23 = vld [vmem:[%s2582_s10 + $0xc40] sm:$0xff]  ;;  %v2052_v18 = vpack.c.bf16 %v705_v12, %v701_v10  ;;  %v752_v10 = vld [vmem:[%s2582_s10 + $0xee8] sm:$0xff]  ;;  %v754_v12 = vld [vmem:[%s2582_s10 + $0xef8] sm:$0xff] }
 0x12b   : > { %2013 = vmatpush1.bf16.msra.mxu1 %v2012_v24  ;;  %1759 = vmatprep.subr.bf16.mxu0 %v1758_v25  ;;  %v671_v24 = vld [vmem:[%s2582_s10 + $0xc60] sm:$0xff]  ;;  %v669_v25 = vld [vmem:[%s2582_s10 + $0xc50] sm:$0xff] }
 0x12c   : > { %2015 = vmatprep.subr.bf16.mxu1 %v2014_v29  ;;  %v680_v29 = vld [vmem:[%s2582_s10 + $0xca8] sm:$0xff]  ;;  %v1780_v33 = vpack.c.bf16 %v671_v24, %v667_v23  ;;  %v2036_v34 = vpack.c.bf16 %v673_v27, %v669_v25  ;;  %v2054_v23 = vpack.c.bf16 %v714_v16, %v710_v15  ;;  %v713_v24 = vld [vmem:[%s2582_s10 + $0xdb0] sm:$0xff]  ;;  %v718_v27 = vld [vmem:[%s2582_s10 + $0xdd8] sm:$0xff] }
 0x12d   : > { %v716_v25 = vld [vmem:[%s2582_s10 + $0xdc8] sm:$0xff]  ;;  %v747_v16 = vld [vmem:[%s2582_s10 + $0xec0] sm:$0xff] }
 0x12e   : > { %1761 = vmatpush1.bf16.msra.mxu0 %v1760_v35  ;;  %v1782_v35 = vpack.c.bf16 %v680_v29, %v676_v28  ;;  %v722_v28 = vld [vmem:[%s2582_s10 + $0xdf8] sm:$0xff] }
 0x12f   : > { %2017 = vmatpush1.bf16.msra.mxu1 %v2016_v36  ;;  %1763 = vmatprep.subr.bf16.mxu0 %v1762_v37  ;;  %v675_v36 = vld [vmem:[%s2582_s10 + $0xc80] sm:$0xff] }
 0x130   : > { %2019 = vmatprep.subr.bf16.mxu1 %v2018_v41  ;;  %v679_v37 = vld [vmem:[%s2582_s10 + $0xca0] sm:$0xff]  ;;  %v684_v41 = vld [vmem:[%s2582_s10 + $0xcc8] sm:$0xff] }
 0x131   : > { %v1784_v45 = vpack.c.bf16 %v679_v37, %v675_v36  ;;  %v721_v36 = vld [vmem:[%s2582_s10 + $0xdf0] sm:$0xff]  ;;  %v724_v37 = vld [vmem:[%s2582_s10 + $0xe08] sm:$0xff] }
 0x132   : > { %1765 = vmatpush1.bf16.msra.mxu0 %v1764_v47  ;;  %v1786_v47 = vpack.c.bf16 %v688_v42, %v684_v41  ;;  %v1806_v43 = vpack.c.bf16 %v728_v38, %v724_v37 }
 0x133   : > { %2021 = vmatpush1.bf16.msra.mxu1 %v2020_v48  ;;  %1767 = vmatprep.subr.bf16.mxu0 %v1766_v49  ;;  %v683_v48 = vld [vmem:[%s2582_s10 + $0xcc0] sm:$0xff] }
 0x134   : > { %2023 = vmatprep.subr.bf16.mxu1 %v2022_v53  ;;  %v687_v49 = vld [vmem:[%s2582_s10 + $0xce0] sm:$0xff]  ;;  %v692_v53 = vld [vmem:[%s2582_s10 + $0xd08] sm:$0xff] }
 0x135   : > { %v1788_v57 = vpack.c.bf16 %v687_v49, %v683_v48  ;;  %v729_v48 = vld [vmem:[%s2582_s10 + $0xe30] sm:$0xff]  ;;  %v732_v49 = vld [vmem:[%s2582_s10 + $0xe48] sm:$0xff] }
 0x136   : > { %1769 = vmatpush1.bf16.msra.mxu0 %v1768_v59  ;;  %v1790_v59 = vpack.c.bf16 %v696_v54, %v692_v53  ;;  %v1810_v55 = vpack.c.bf16 %v736_v50, %v732_v49 }
 0x137   : > { %2025 = vmatpush1.bf16.msra.mxu1 %v2024_v60  ;;  %1771 = vmatprep.subr.bf16.mxu0 %v1770_v61  ;;  %v691_v60 = vld [vmem:[%s2582_s10 + $0xd00] sm:$0xff] }
 0x138   : > { %2027 = vmatprep.subr.bf16.mxu1 %v2026_v1  ;;  %v695_v61 = vld [vmem:[%s2582_s10 + $0xd20] sm:$0xff]  ;;  %v700_v1 = vld [vmem:[%s2582_s10 + $0xd48] sm:$0xff] }
 0x139   : > { %v1792_v5 = vpack.c.bf16 %v695_v61, %v691_v60  ;;  %v737_v60 = vld [vmem:[%s2582_s10 + $0xe70] sm:$0xff]  ;;  %v740_v61 = vld [vmem:[%s2582_s10 + $0xe88] sm:$0xff] }
 0x13a   : > { %1773 = vmatpush1.bf16.msra.mxu0 %v1772_v7  ;;  %v1794_v7 = vpack.c.bf16 %v704_v2, %v700_v1  ;;  %v1814_v3 = vpack.c.bf16 %v744_v62, %v740_v61 }
 0x13b   : > { %2029 = vmatpush1.bf16.msra.mxu1 %v2028_v8  ;;  %1775 = vmatprep.subr.bf16.mxu0 %v1774_v9  ;;  %v699_v8 = vld [vmem:[%s2582_s10 + $0xd40] sm:$0xff] }
 0x13c   : > { %2031 = vmatprep.subr.bf16.mxu1 %v2030_v13  ;;  %v703_v9 = vld [vmem:[%s2582_s10 + $0xd60] sm:$0xff]  ;;  %v708_v13 = vld [vmem:[%s2582_s10 + $0xd88] sm:$0xff] }
 0x13d   : > { %994 = vmatmul.mubr.f32.vlgmr.msra.gmra.mrb[0].mxu0 %v271_v19  ;;  %v1796_v17 = vpack.c.bf16 %v703_v9, %v699_v8  ;;  %v745_v8 = vld [vmem:[%s2582_s10 + $0xeb0] sm:$0xff]  ;;  %v748_v9 = vld [vmem:[%s2582_s10 + $0xec8] sm:$0xff] }
 0x13e   : > { %1777 = vmatpush1.bf16.msra.mxu0 %v1776_v20  ;;  %1278 = vmatmul.mubr.f32.vlgmr.msra.gmra.mrb[0].mxu1 %v271_v19  ;;  %v1798_v19 = vpack.c.bf16 %v712_v14, %v708_v13  ;;  %v707_v20 = vld [vmem:[%s2582_s10 + $0xd80] sm:$0xff]  ;;  %v1818_v15 = vpack.c.bf16 %v752_v10, %v748_v9 }
 0x13f   : > { %2033 = vmatpush1.bf16.msra.mxu1 %v2032_v21  ;;  %1779 = vmatprep.subr.bf16.mxu0 %v1778_v22  ;;  %v711_v21 = vld [vmem:[%s2582_s10 + $0xda0] sm:$0xff]  ;;  %v709_v22 = vld [vmem:[%s2582_s10 + $0xd90] sm:$0xff] }
 0x140   : > { %2035 = vmatprep.subr.bf16.mxu1 %v2034_v26  ;;  %1064 = vmatprep.mubr.f32.mxu0 %v274_v32  ;;  %v720_v26 = vld [vmem:[%s2582_s10 + $0xde8] sm:$0xff]  ;;  %v1800_v29 = vpack.c.bf16 %v711_v21, %v707_v20  ;;  %v2056_v30 = vpack.c.bf16 %v713_v24, %v709_v22  ;;  %v753_v20 = vld [vmem:[%s2582_s10 + $0xef0] sm:$0xff]  ;;  %v762_v24 = vld [vmem:[%s2582_s10 + $0xf38] sm:$0xff] }
 0x141   : > { %1348 = vmatprep.mubr.f32.mxu1 %v274_v32  ;;  %v1802_v31 = vpack.c.bf16 %v720_v26, %v716_v25  ;;  %v715_v32 = vld [vmem:[%s2582_s10 + $0xdc0] sm:$0xff]  ;;  %v756_v21 = vld [vmem:[%s2582_s10 + $0xf08] sm:$0xff] }
 0x142   : > { %1781 = vmatpush1.bf16.msra.mxu0 %v1780_v33  ;;  %v719_v33 = vld [vmem:[%s2582_s10 + $0xde0] sm:$0xff]  ;;  %v760_v22 = vld [vmem:[%s2582_s10 + $0xf28] sm:$0xff] }
 0x143   : > { %2037 = vmatpush1.bf16.msra.mxu1 %v2036_v34  ;;  %1783 = vmatprep.subr.bf16.mxu0 %v1782_v35  ;;  %v717_v34 = vld [vmem:[%s2582_s10 + $0xdd0] sm:$0xff]  ;;  %v2058_v35 = vpack.c.bf16 %v722_v28, %v718_v27  ;;  %v1804_v41 = vpack.c.bf16 %v719_v33, %v715_v32  ;;  %v1822_v27 = vpack.c.bf16 %v760_v22, %v756_v21  ;;  %v755_v28 = vld [vmem:[%s2582_s10 + $0xf00] sm:$0xff]  ;;  %v764_v33 = vld [vmem:[%s2582_s10 + $0xf48] sm:$0xff] }
 0x144   : > { %2039 = vmatprep.subr.bf16.mxu1 %v2038_v39  ;;  %v726_v39 = vld [vmem:[%s2582_s10 + $0xe18] sm:$0xff]  ;;  %v2060_v42 = vpack.c.bf16 %v721_v36, %v717_v34  ;;  %v761_v32 = vld [vmem:[%s2582_s10 + $0xf30] sm:$0xff]  ;;  %v768_v34 = vld [vmem:[%s2582_s10 + $0xf68] sm:$0xff] }
 0x145   : > { %v770_v36 = vld [vmem:[%s2582_s10 + $0xf78] sm:$0xff] }
 0x146   : > { %1785 = vmatpush1.bf16.msra.mxu0 %v1784_v45  ;;  %v727_v45 = vld [vmem:[%s2582_s10 + $0xe20] sm:$0xff] }
 0x147   : > { %2041 = vmatpush1.bf16.msra.mxu1 %v2040_v46  ;;  %1787 = vmatprep.subr.bf16.mxu0 %v1786_v47  ;;  %v725_v46 = vld [vmem:[%s2582_s10 + $0xe10] sm:$0xff]  ;;  %v2062_v47 = vpack.c.bf16 %v730_v40, %v726_v39  ;;  %v1808_v53 = vpack.c.bf16 %v727_v45, %v723_v44  ;;  %v1826_v39 = vpack.c.bf16 %v768_v34, %v764_v33  ;;  %v763_v40 = vld [vmem:[%s2582_s10 + $0xf40] sm:$0xff]  ;;  %v772_v45 = vld [vmem:[%s2582_s10 + $0xf88] sm:$0xff] }
 0x148   : > { %2043 = vmatprep.subr.bf16.mxu1 %v2042_v51  ;;  %v734_v51 = vld [vmem:[%s2582_s10 + $0xe58] sm:$0xff]  ;;  %v2064_v54 = vpack.c.bf16 %v729_v48, %v725_v46  ;;  %v769_v44 = vld [vmem:[%s2582_s10 + $0xf70] sm:$0xff]  ;;  %v776_v46 = vld [vmem:[%s2582_s10 + $0xfa8] sm:$0xff] }
 0x149   : > { %v778_v48 = vld [vmem:[%s2582_s10 + $0xfb8] sm:$0xff] }
 0x14a   : > { %1789 = vmatpush1.bf16.msra.mxu0 %v1788_v57  ;;  %v735_v57 = vld [vmem:[%s2582_s10 + $0xe60] sm:$0xff] }
 0x14b   : > { %2045 = vmatpush1.bf16.msra.mxu1 %v2044_v58  ;;  %1791 = vmatprep.subr.bf16.mxu0 %v1790_v59  ;;  %v733_v58 = vld [vmem:[%s2582_s10 + $0xe50] sm:$0xff]  ;;  %v2066_v59 = vpack.c.bf16 %v738_v52, %v734_v51  ;;  %v1812_v1 = vpack.c.bf16 %v735_v57, %v731_v56  ;;  %v1830_v51 = vpack.c.bf16 %v776_v46, %v772_v45  ;;  %v771_v52 = vld [vmem:[%s2582_s10 + $0xf80] sm:$0xff]  ;;  %v780_v57 = vld [vmem:[%s2582_s10 + $0xfc8] sm:$0xff] }
 0x14c   : > { %2047 = vmatprep.subr.bf16.mxu1 %v2046_v63  ;;  %v742_v63 = vld [vmem:[%s2582_s10 + $0xe98] sm:$0xff]  ;;  %v2068_v2 = vpack.c.bf16 %v737_v60, %v733_v58  ;;  %v777_v56 = vld [vmem:[%s2582_s10 + $0xfb0] sm:$0xff]  ;;  %v784_v58 = vld [vmem:[%s2582_s10 + $0xfe8] sm:$0xff] }
 0x14d   : > { %v786_v60 = vld [vmem:[%s2582_s10 + $0xff8] sm:$0xff] }
 0x14e   : > { %1793 = vmatpush1.bf16.msra.mxu0 %v1792_v5  ;;  %v743_v5 = vld [vmem:[%s2582_s10 + $0xea0] sm:$0xff] }
 0x14f   : > { %2049 = vmatpush1.bf16.msra.mxu1 %v2048_v6  ;;  %1795 = vmatprep.subr.bf16.mxu0 %v1794_v7  ;;  %v741_v6 = vld [vmem:[%s2582_s10 + $0xe90] sm:$0xff]  ;;  %v2070_v7 = vpack.c.bf16 %v746_v0, %v742_v63  ;;  %v1816_v13 = vpack.c.bf16 %v743_v5, %v739_v4  ;;  %v1834_v63 = vpack.c.bf16 %v784_v58, %v780_v57  ;;  %v779_v0 = vld [vmem:[%s2582_s10 + $0xfc0] sm:$0xff] }
 0x150   : > { %2051 = vmatprep.subr.bf16.mxu1 %v2050_v11  ;;  %v750_v11 = vld [vmem:[%s2582_s10 + $0xed8] sm:$0xff]  ;;  %v2072_v14 = vpack.c.bf16 %v745_v8, %v741_v6  ;;  %v785_v4 = vld [vmem:[%s2582_s10 + $0xff0] sm:$0xff]  ;;  %v1388_v8 = vlaneseq }
 0x152   : > { %1797 = vmatpush1.bf16.msra.mxu0 %v1796_v17  ;;  %v751_v17 = vld [vmem:[%s2582_s10 + $0xee0] sm:$0xff]  ;;  %v1389_v9 = vshrl.u32 %v1388_v8, 7 }
 0x153   : > { %2053 = vmatpush1.bf16.msra.mxu1 %v2052_v18  ;;  %1799 = vmatprep.subr.bf16.mxu0 %v1798_v19  ;;  %v749_v18 = vld [vmem:[%s2582_s10 + $0xed0] sm:$0xff]  ;;  %v2074_v19 = vpack.c.bf16 %v754_v12, %v750_v11  ;;  %v1820_v25 = vpack.c.bf16 %v751_v17, %v747_v16  ;;  %v1386_v11 = vld [vmem:[%s234_s7] sm:$0xf] }
 0x154   : > { %2055 = vmatprep.subr.bf16.mxu1 %v2054_v23  ;;  %v758_v23 = vld [vmem:[%s2582_s10 + $0xf18] sm:$0xff]  ;;  %v2076_v26 = vpack.c.bf16 %v753_v20, %v749_v18  ;;  %v1390_v10 = vsub.s32 0, %v1389_v9  ;;  %v1398_v12 = vsub.s32 2, %v1389_v9 }
 0x156   : > { %1801 = vmatpush1.bf16.msra.mxu0 %v1800_v29  ;;  %v759_v29 = vld [vmem:[%s2582_s10 + $0xf20] sm:$0xff]  ;;  %v1399_v16 = vrot.slane %v1386_v11, %v1398_v12 }
 0x157   : > { %2057 = vmatpush1.bf16.msra.mxu1 %v2056_v30  ;;  %1803 = vmatprep.subr.bf16.mxu0 %v1802_v31  ;;  %v757_v30 = vld [vmem:[%s2582_s10 + $0xf10] sm:$0xff]  ;;  %v2078_v31 = vpack.c.bf16 %v762_v24, %v758_v23  ;;  %v1824_v37 = vpack.c.bf16 %v759_v29, %v755_v28 }
 0x158   : > { %2059 = vmatprep.subr.bf16.mxu1 %v2058_v35  ;;  %v766_v35 = vld [vmem:[%s2582_s10 + $0xf58] sm:$0xff]  ;;  %v2080_v38 = vpack.c.bf16 %v761_v32, %v757_v30 }
 0x15a   : > { %1805 = vmatpush1.bf16.msra.mxu0 %v1804_v41  ;;  %v767_v41 = vld [vmem:[%s2582_s10 + $0xf60] sm:$0xff] }
 0x15b   : > { %2061 = vmatpush1.bf16.msra.mxu1 %v2060_v42  ;;  %1807 = vmatprep.subr.bf16.mxu0 %v1806_v43  ;;  %v765_v42 = vld [vmem:[%s2582_s10 + $0xf50] sm:$0xff]  ;;  %v2082_v43 = vpack.c.bf16 %v770_v36, %v766_v35  ;;  %v1828_v49 = vpack.c.bf16 %v767_v41, %v763_v40 }
 0x15c   : > { %2063 = vmatprep.subr.bf16.mxu1 %v2062_v47  ;;  %v774_v47 = vld [vmem:[%s2582_s10 + $0xf98] sm:$0xff]  ;;  %v2084_v50 = vpack.c.bf16 %v769_v44, %v765_v42 }
 0x15e   : > { %1809 = vmatpush1.bf16.msra.mxu0 %v1808_v53  ;;  %v775_v53 = vld [vmem:[%s2582_s10 + $0xfa0] sm:$0xff] }
 0x15f   : > { %2065 = vmatpush1.bf16.msra.mxu1 %v2064_v54  ;;  %1811 = vmatprep.subr.bf16.mxu0 %v1810_v55  ;;  %v773_v54 = vld [vmem:[%s2582_s10 + $0xf90] sm:$0xff]  ;;  %v2086_v55 = vpack.c.bf16 %v778_v48, %v774_v47  ;;  %v1832_v61 = vpack.c.bf16 %v775_v53, %v771_v52 }
 0x160   : > { %2067 = vmatprep.subr.bf16.mxu1 %v2066_v59  ;;  %v782_v59 = vld [vmem:[%s2582_s10 + $0xfd8] sm:$0xff]  ;;  %v2088_v62 = vpack.c.bf16 %v777_v56, %v773_v54 }
 0x162   : > { %1813 = vmatpush1.bf16.msra.mxu0 %v1812_v1  ;;  %v783_v1 = vld [vmem:[%s2582_s10 + $0xfe0] sm:$0xff] }
 0x163   : > { %2069 = vmatpush1.bf16.msra.mxu1 %v2068_v2  ;;  %1815 = vmatprep.subr.bf16.mxu0 %v1814_v3  ;;  %v2090_v2 = vpack.c.bf16 %v786_v60, %v782_v59  ;;  %v781_v3 = vld [vmem:[%s2582_s10 + $0xfd0] sm:$0xff]  ;;  %v1836_v5 = vpack.c.bf16 %v783_v1, %v779_v0 }
 0x164   : > { %2071 = vmatprep.subr.bf16.mxu1 %v2070_v7  ;;  %v2092_v6 = vpack.c.bf16 %v785_v4, %v781_v3  ;;  %v273_v7 = vld [vmem:[#allocation2 + $0x30] sm:$0xff] }
 0x166   : > { %1817 = vmatpush1.bf16.msra.mxu0 %v1816_v13  ;;  %v1394_v13 = vsub.s32 1, %v1389_v9 }
 0x167   : > { %2073 = vmatpush1.bf16.msra.mxu1 %v2072_v14  ;;  %1819 = vmatprep.subr.bf16.mxu0 %v1818_v15  ;;  %v1402_v14 = vsub.s32 3, %v1389_v9  ;;  %v1391_v15 = vrot.slane %v1386_v11, %v1390_v10 }
 0x168   : > { %2075 = vmatprep.subr.bf16.mxu1 %v2074_v19  ;;  %v1395_v17 = vrot.slane %v1386_v11, %v1394_v13 }
 0x169   : > { %v1403_v18 = vrot.slane %v1386_v11, %v1402_v14 }
 0x16a   : > { %1821 = vmatpush1.bf16.msra.mxu0 %v1820_v25 }
 0x16b   : > { %2077 = vmatpush1.bf16.msra.mxu1 %v2076_v26  ;;  %1823 = vmatprep.subr.bf16.mxu0 %v1822_v27 }
 0x16c   : > { %2079 = vmatprep.subr.bf16.mxu1 %v2078_v31 }
 0x16e   : > { %1825 = vmatpush1.bf16.msra.mxu0 %v1824_v37 }
 0x16f   : > { %2081 = vmatpush1.bf16.msra.mxu1 %v2080_v38  ;;  %1827 = vmatprep.subr.bf16.mxu0 %v1826_v39 }
 0x170   : > { %2083 = vmatprep.subr.bf16.mxu1 %v2082_v43 }
 0x172   : > { %1829 = vmatpush1.bf16.msra.mxu0 %v1828_v49 }
 0x173   : > { %2085 = vmatpush1.bf16.msra.mxu1 %v2084_v50  ;;  %1831 = vmatprep.subr.bf16.mxu0 %v1830_v51 }
 0x174   : > { %2087 = vmatprep.subr.bf16.mxu1 %v2086_v55 }
 0x176   : > { %1833 = vmatpush1.bf16.msra.mxu0 %v1832_v61 }
 0x177   : > { %2089 = vmatpush1.bf16.msra.mxu1 %v2088_v62  ;;  %1835 = vmatprep.subr.bf16.mxu0 %v1834_v63 }
 0x178   : > { %2091 = vmatprep.subr.bf16.mxu1 %v2090_v2 }
 0x17a   : > { %1837 = vmatpush1.bf16.msra.mxu0 %v1836_v5 }
 0x17b   : > { %2093 = vmatpush1.bf16.msra.mxu1 %v2092_v6 }
 0x17d   : > { %1065 = vmatmul.mubr.f32.vlgmr.msra.gmra.mrb[0].mxu0 %v273_v7 }
 0x17e   : > { %1349 = vmatmul.mubr.f32.vlgmr.msra.gmra.mrb[0].mxu1 %v273_v7 }
 0x250   : > { %v1066_v19 = vpop.f32.mrb[0].mxu0 }
 0x251   : > { %v1408_v20 = vadd.f32 %v1391_v15, %v1066_v19  ;;  %v1350_v21 = vpop.f32.mrb[0].mxu1  ;;  %v1068_v22 = vpop.f32.mrb[1].mxu0 }
 0x252   : > { %v1410_v23 = vadd.f32 %v1399_v16, %v1350_v21  ;;  %v1409_v24 = vadd.f32 %v1395_v17, %v1068_v22  ;;  %v1352_v25 = vpop.f32.mrb[1].mxu1 }
 0x253   : > { %vm1412_vm0 = vcmp.gt.f32.partialorder %v1408_v20, 0.0  ;;  %v1416_v26 = vmul.f32 0.2, %v1408_v20  ;;  %v1411_v27 = vadd.f32 %v1403_v18, %v1352_v25 }
 0x254   : > { %vm1414_vm1 = vcmp.gt.f32.partialorder %v1410_v23, 0.0  ;;  %v1418_v28 = vmul.f32 0.2, %v1410_v23  ;;  %vm1413_vm2 = vcmp.gt.f32.partialorder %v1409_v24, 0.0  ;;  %v1417_v29 = vmul.f32 0.2, %v1409_v24 }
 0x255   : > { %v1420_v30 = vsel %vm1412_vm0, %v1408_v20, %v1416_v26  ;;  %vm1415_vm3 = vcmp.gt.f32.partialorder %v1411_v27, 0.0  ;;  %v1419_v31 = vmul.f32 0.2, %v1411_v27 }
 0x256   : > { %1424 = vst [vmem:[%s261_s27] sm:$0xff] %v1420_v30  ;;  %v1422_v32 = vsel %vm1414_vm1, %v1410_v23, %v1418_v28  ;;  %v1421_v33 = vsel %vm1413_vm2, %v1409_v24, %v1417_v29 }
 0x257   : > { %1426 = vst [vmem:[%s261_s27 + $0x10] sm:$0xff] %v1422_v32  ;;  %1425 = vst [vmem:[%s261_s27 + $0x8] sm:$0xff] %v1421_v33  ;;  %v1423_v34 = vsel %vm1415_vm3, %v1411_v27, %v1419_v31 }
 0x258   : > { %1427 = vst [vmem:[%s261_s27 + $0x18] sm:$0xff] %v1423_v34 }
 0x259   : > { %2288 = shalt.err (!%p2285_p2)
}
 0x25a   : > { %s2289_s23 = scalar_lea.hbm %s3106_s8, 512  ;;  %s2293_s6 = scalar_lea.hbm %s3158_s3, 1024 }
 0x25b   : > { %p2290_p6 = scmp.ne.s32.totalorder %s3106_s8, %s2289_s23  ;;  %p2294_p8 = scmp.lt.u32.totalorder %s3106_s8, %s3158_s3 }
 0x25c   : > { %p2295_p5 = scmp.lt.u32.totalorder %s2293_s6, %s2289_s23  ;;  %p2297_p10 = scmp.lt.u32.totalorder %s2289_s23, %s3106_s8 }
 0x25d   : > { %p2291_p12 = pnand %p2290_p6, %p3177_p13 }
 0x25e   : > { %p2296_p11 = por %p2295_p5, %p2294_p8 }
 0x25f   : > { %p2292_p9 = pneg %p2291_p12 }
 0x260   : > { %p2298_p0 = por %p2297_p10, %p2296_p11 }
 0x262   : > { %p2299_p7 = pnand %p2298_p0, %p2292_p9 }
 0x264   : > { %2302 = shalt.err (!%p2299_p7)
}
 0x265   : > { %2114 = dma.vmem_to_hbm [thread:$0]  (%p3177_p13), %s3108_s19, 512, %s3106_s8, %s1429_s15  }
 0x266 PF: > { %s1455_s7 = sand.u32 1, %s2341_s12   ;;  %p3178_p4 = scmp.ne.s32.totalorder %s3169_s4, 0 }
 0x267   : > { %p3179_p1 = scmp.ge.s32.totalorder %s2361_s17, 2  ;;  %s1456_s9 = scalar_lea.sflag [#allocation4], %s1455_s7 }
 0x269   : > { %p2128_p3 = pnand %p3179_p1, %p3178_p4 }
 0x26b   : > { %2336 = dma.done.wait (!%p2128_p3), %s1456_s9, 512  }
 0x26c   : > { %2338 = vsyncadd (!%p2128_p3), %s1456_s9, 4294966784  ;;  %s20_s17 = sadd.s32 1, %s2361_s17   ;;  %s3180_s12 = smov %s2345_s13 }
 0x26d   : > { %p17_p2 = scmp.ge.s32.totalorder %s20_s17, 4   ;;  %s3181_s13 = smov %s2349_s14 }
 0x26e   : > { %s3182_s14 = smov %s2438_s24  ;;  %s3183_s15 = smov %s2357_s16 }
 0x26f   : > { %s3184_s16 = smov %s3186_s18  ;;  %19 = sbr.rel (!%p17_p2) target bundleno = 9 (0x9), region = 106 }
 0x276   :  { %1461 = vsyncpa [#allocation3], 1 }
 0x277   :  { %1463 = vsyncpa [#allocation3 + $0x1], 1 }
 0x278   :  { %1464 = vsyncpa [#allocation6], 1 }
 0x279   :  { %1466 = vsyncpa [#allocation6 + $0x1], 1 }
 0x27a   :  { %1467 = vsyncpa [#allocation4], 1 }
 0x27b   :  { %1469 = vsyncpa [#allocation4 + $0x1], 1 }

</bundles_post_ra>
